<compile_context>
chip_gen: v5e
topology: v5e:2x2
jax: 0.10.0
libtpu: 0.0.40
codegen_flags: <defaults>
</compile_context>

<pallas_src>
import functools

import jax
import jax.numpy as jnp
from jax.experimental import pallas as pl
from jax.experimental.pallas import tpu as pltpu


# ------------------------------ Fused kernel ----------------------------------

def _fused_lstm_linear_kernel(*refs, num_layers, T, B, H):
    """refs = [x, (w_ih_t, w_hh_t, b) * L, w_out_t, b_out, out].

    x:        (T*B, D)   time-major, flattened over (t, b)
    w_ih_t:   (D_l, 4H)  transposed input-hidden weights, gate order i,f,g,o
    w_hh_t:   (H, 4H)    transposed hidden-hidden weights
    b:        (1, 4H)    b_ih + b_hh
    w_out_t:  (H, O), b_out: (1, O)
    out:      (B, O)
    """
    x_ref = refs[0]
    layer_refs = refs[1:1 + 3 * num_layers]
    w_out_ref = refs[1 + 3 * num_layers]
    b_out_ref = refs[2 + 3 * num_layers]
    out_ref = refs[3 + 3 * num_layers]

    # Weights cast to bf16 once per layer (single-pass MXU); biases stay f32.
    w_ih = [layer_refs[3 * l][...].astype(jnp.bfloat16) for l in range(num_layers)]
    w_hh = [layer_refs[3 * l + 1][...].astype(jnp.bfloat16) for l in range(num_layers)]
    bias = [layer_refs[3 * l + 2][...] for l in range(num_layers)]

    # Layer-0 input projection hoisted out of the recurrence: one batched
    # (T*B, D) x (D, 4H) matmul + bias for all timesteps.
    x_bf16 = x_ref[...].astype(jnp.bfloat16)
    proj0 = jnp.dot(x_bf16, w_ih[0], preferred_element_type=jnp.float32) + bias[0]

    h = [jnp.zeros((B, H), jnp.float32) for _ in range(num_layers)]
    c = [jnp.zeros((B, H), jnp.float32) for _ in range(num_layers)]

    def lstm_cell(gates, c_prev):
        # Full-width activations over (B, 4H) — two EUP passes — then static
        # lane slices.  PyTorch gate order: i, f, g, o.
        sig = jax.nn.sigmoid(gates)
        th = jnp.tanh(gates)
        i_g = sig[:, 0 * H:1 * H]
        f_g = sig[:, 1 * H:2 * H]
        g_g = th[:, 2 * H:3 * H]
        o_g = sig[:, 3 * H:4 * H]
        c_new = f_g * c_prev + i_g * g_g
        h_new = o_g * jnp.tanh(c_new)
        return h_new, c_new

    # Wavefront over diagonals: at diagonal s, layer l processes t = s - l.
    # Layers iterated in DESCENDING order so layer l reads h[l-1] from
    # diagonal s-1 (i.e. h_{l-1}(t)) before layer l-1 overwrites it.
    # Dependent chain length: T + L - 1 instead of T * L.
    for s in range(T + num_layers - 1):
        for l in range(num_layers - 1, -1, -1):
            t = s - l
            if t < 0 or t >= T:
                continue
            if l == 0:
                inp_proj = proj0[t * B:(t + 1) * B, :]                    # (B, 4H)
            else:
                inp_proj = jnp.dot(h[l - 1].astype(jnp.bfloat16), w_ih[l],
                                   preferred_element_type=jnp.float32) + bias[l]
            gates = inp_proj + jnp.dot(h[l].astype(jnp.bfloat16), w_hh[l],
                                       preferred_element_type=jnp.float32)
            h[l], c[l] = lstm_cell(gates, c[l])

    # Only h at t = T-1 of the last layer feeds the head (== lstm_out[:, -1, :]).
    # Dropout: identity in eval mode.
    out_ref[...] = (
        jnp.dot(h[num_layers - 1], w_out_ref[...],
                preferred_element_type=jnp.float32)
        + b_out_ref[...]
    ).astype(out_ref.dtype)


def lstm_vanilla_forward(x, params):
    """x: (B, T, input_size) float32 (== x['historic'] in the PyTorch module)."""
    B, T, D = x.shape
    layers = params["lstm_layers"]
    L = len(layers)
    H = layers[0]["w_hh_t"].shape[0]
    O = params["w_out_t"].shape[1]

    # time-major, flattened over (t, b): row t*B + b  <->  (t, b)
    x_tm = jnp.transpose(x, (1, 0, 2)).reshape(T * B, D)

    inputs = [x_tm]
    for layer in layers:
        inputs += [layer["w_ih_t"], layer["w_hh_t"], layer["b"]]
    inputs += [params["w_out_t"], params["b_out"]]

    kernel = functools.partial(
        _fused_lstm_linear_kernel, num_layers=L, T=T, B=B, H=H)

    vmem_spec = pl.BlockSpec(memory_space=pltpu.MemorySpace.VMEM)
    return pl.pallas_call(
        kernel,
        out_shape=jax.ShapeDtypeStruct((B, O), jnp.float32),
        in_specs=[vmem_spec] * len(inputs),
        out_specs=vmem_spec,
    )(*inputs)


# ------------------------- Pure-JAX reference (checking) ----------------------

def lstm_vanilla_reference(x, params):
    xt = jnp.transpose(x, (1, 0, 2))
    for layer in params["lstm_layers"]:
        T, B, _ = xt.shape
        H = layer["w_hh_t"].shape[0]
        h = jnp.zeros((B, H), jnp.float32)
        c = jnp.zeros((B, H), jnp.float32)
        outs = []
        for t in range(T):
            gates = xt[t] @ layer["w_ih_t"] + h @ layer["w_hh_t"] + layer["b"]
            i_g = jax.nn.sigmoid(gates[:, 0 * H:1 * H])
            f_g = jax.nn.sigmoid(gates[:, 1 * H:2 * H])
            g_g = jnp.tanh(gates[:, 2 * H:3 * H])
            o_g = jax.nn.sigmoid(gates[:, 3 * H:4 * H])
            c = f_g * c + i_g * g_g
            h = o_g * jnp.tanh(c)
            outs.append(h)
        xt = jnp.stack(outs, axis=0)
    return xt[-1] @ params["w_out_t"] + params["b_out"]


# ---------------------------------- Main ---------------------------------------

def init_params(key, input_size, hidden, num_layers, output_size):
    params = {"lstm_layers": []}
    bound = 1.0 / jnp.sqrt(hidden)
    for layer_idx in range(num_layers):
        d_in = input_size if layer_idx == 0 else hidden
        key, k1, k2, k3, k4 = jax.random.split(key, 5)
        w_ih = jax.random.uniform(k1, (4 * hidden, d_in), jnp.float32, -bound, bound)
        w_hh = jax.random.uniform(k2, (4 * hidden, hidden), jnp.float32, -bound, bound)
        b_ih = jax.random.uniform(k3, (4 * hidden,), jnp.float32, -bound, bound)
        b_hh = jax.random.uniform(k4, (4 * hidden,), jnp.float32, -bound, bound)
        params["lstm_layers"].append({
            "w_ih_t": w_ih.T,                       # (D, 4H)
            "w_hh_t": w_hh.T,                       # (H, 4H)
            "b": (b_ih + b_hh)[None, :],            # (1, 4H)
        })
    key, k5, k6 = jax.random.split(key, 3)
    lb = 1.0 / jnp.sqrt(hidden)
    w_out = jax.random.uniform(k5, (output_size, hidden), jnp.float32, -lb, lb)
    b_out = jax.random.uniform(k6, (output_size,), jnp.float32, -lb, lb)
    params["w_out_t"] = w_out.T                     # (H, O)
    params["b_out"] = b_out[None, :]                # (1, O)
    return params


if __name__ == "__main__":
    config = {
        "LSTM_input_size": 4,
        "LSTM_hidden_size": 32,
        "LSTM_num_layers": 2,
        "forecast_sequence_length": 8,
        "dropout_rate": 0.1,   # identity in eval mode
    }
    B, T = 2, 8

    key = jax.random.PRNGKey(0)
    key, kx = jax.random.split(key)
    x_historic = jax.random.normal(kx, (B, T, config["LSTM_input_size"]), jnp.float32)

    params = init_params(
        key,
        config["LSTM_input_size"],
        config["LSTM_hidden_size"],
        config["LSTM_num_layers"],
        config["forecast_sequence_length"],
    )

    out = lstm_vanilla_forward(x_historic, params)
    out = jax.block_until_ready(out)

    ref = lstm_vanilla_reference(x_historic, params)
    assert out.shape == (B, config["forecast_sequence_length"])
    # bf16 MXU operands in the kernel vs f32 reference: loosened tolerance.
    assert jnp.allclose(out, ref, rtol=2e-2, atol=2e-2), "mismatch vs reference"

    print("KERNEL_OK")
</pallas_src>

<mosaic_0001>
module attributes {stable_mosaic.version = 11 : i64} {
  func.func @_fused_lstm_linear_kernel(%arg0: memref<16x4xf32, #tpu.memory_space<vmem>>, %arg1: memref<4x128xf32, #tpu.memory_space<vmem>>, %arg2: memref<32x128xf32, #tpu.memory_space<vmem>>, %arg3: memref<1x128xf32, #tpu.memory_space<vmem>>, %arg4: memref<32x128xf32, #tpu.memory_space<vmem>>, %arg5: memref<32x128xf32, #tpu.memory_space<vmem>>, %arg6: memref<1x128xf32, #tpu.memory_space<vmem>>, %arg7: memref<32x8xf32, #tpu.memory_space<vmem>>, %arg8: memref<1x8xf32, #tpu.memory_space<vmem>>, %arg9: memref<2x8xf32, #tpu.memory_space<vmem>>) attributes {dimension_semantics = [], scalar_prefetch = 0 : i64, scratch_operands = 0 : i64, tpu.core_type = #tpu.core_type<tc>} {
    %c0 = arith.constant 0 : index
    %c0_0 = arith.constant 0 : index
    %0 = vector.load %arg1[%c0, %c0_0] : memref<4x128xf32, #tpu.memory_space<vmem>>, vector<4x128xf32>
    %1 = arith.truncf %0 : vector<4x128xf32> to vector<4x128xbf16>
    %c0_1 = arith.constant 0 : index
    %c0_2 = arith.constant 0 : index
    %2 = vector.load %arg4[%c0_1, %c0_2] : memref<32x128xf32, #tpu.memory_space<vmem>>, vector<32x128xf32>
    %3 = arith.truncf %2 : vector<32x128xf32> to vector<32x128xbf16>
    %c0_3 = arith.constant 0 : index
    %c0_4 = arith.constant 0 : index
    %4 = vector.load %arg2[%c0_3, %c0_4] : memref<32x128xf32, #tpu.memory_space<vmem>>, vector<32x128xf32>
    %5 = arith.truncf %4 : vector<32x128xf32> to vector<32x128xbf16>
    %c0_5 = arith.constant 0 : index
    %c0_6 = arith.constant 0 : index
    %6 = vector.load %arg5[%c0_5, %c0_6] : memref<32x128xf32, #tpu.memory_space<vmem>>, vector<32x128xf32>
    %7 = arith.truncf %6 : vector<32x128xf32> to vector<32x128xbf16>
    %c0_7 = arith.constant 0 : index
    %c0_8 = arith.constant 0 : index
    %8 = vector.load %arg3[%c0_7, %c0_8] : memref<1x128xf32, #tpu.memory_space<vmem>>, vector<1x128xf32>
    %c0_9 = arith.constant 0 : index
    %c0_10 = arith.constant 0 : index
    %9 = vector.load %arg6[%c0_9, %c0_10] : memref<1x128xf32, #tpu.memory_space<vmem>>, vector<1x128xf32>
    %c0_11 = arith.constant 0 : index
    %c0_12 = arith.constant 0 : index
    %10 = vector.load %arg0[%c0_11, %c0_12] : memref<16x4xf32, #tpu.memory_space<vmem>>, vector<16x4xf32>
    %11 = arith.truncf %10 : vector<16x4xf32> to vector<16x4xbf16>
    %cst = arith.constant dense<0.000000e+00> : vector<16x128xf32>
    %12 = tpu.matmul %11, %1, %cst {dimension_numbers = #tpu.dot_dimension_numbers<[1], [0], [0], [1], [0, 0, 1, 1], [], []>} : vector<16x4xbf16>, vector<4x128xbf16>, vector<16x128xf32> -> vector<16x128xf32>
    %13 = vector.broadcast %8 : vector<1x128xf32> to vector<16x128xf32>
    %14 = arith.addf %12, %13 : vector<16x128xf32>
    %cst_13 = arith.constant 0.000000e+00 : f32
    %15 = vector.broadcast %cst_13 : f32 to vector<2x32xf32>
    %cst_14 = arith.constant 0.000000e+00 : f32
    %16 = vector.broadcast %cst_14 : f32 to vector<2x32xf32>
    %cst_15 = arith.constant 0.000000e+00 : f32
    %17 = vector.broadcast %cst_15 : f32 to vector<2x32xf32>
    %cst_16 = arith.constant 0.000000e+00 : f32
    %18 = vector.broadcast %cst_16 : f32 to vector<2x32xf32>
    %19 = vector.extract_strided_slice %14 {offsets = [0, 0], sizes = [2, 128], strides = [1, 1]} : vector<16x128xf32> to vector<2x128xf32>
    %20 = arith.truncf %15 : vector<2x32xf32> to vector<2x32xbf16>
    %cst_17 = arith.constant dense<0.000000e+00> : vector<2x128xf32>
    %21 = tpu.matmul %20, %5, %cst_17 {dimension_numbers = #tpu.dot_dimension_numbers<[1], [0], [0], [1], [0, 0, 1, 1], [], []>} : vector<2x32xbf16>, vector<32x128xbf16>, vector<2x128xf32> -> vector<2x128xf32>
    %22 = arith.addf %19, %21 : vector<2x128xf32>
    %23 = arith.negf %22 : vector<2x128xf32>
    %24 = math.exp %23 : vector<2x128xf32>
    %cst_18 = arith.constant 1.000000e+00 : f32
    %25 = vector.broadcast %cst_18 : f32 to vector<2x128xf32>
    %26 = arith.addf %25, %24 : vector<2x128xf32>
    %27 = arith.divf %25, %26 : vector<2x128xf32>
    %28 = math.tanh %22 : vector<2x128xf32>
    %29 = vector.extract_strided_slice %27 {offsets = [0, 0], sizes = [2, 32], strides = [1, 1]} : vector<2x128xf32> to vector<2x32xf32>
    %30 = vector.extract_strided_slice %27 {offsets = [0, 32], sizes = [2, 32], strides = [1, 1]} : vector<2x128xf32> to vector<2x32xf32>
    %31 = vector.extract_strided_slice %28 {offsets = [0, 64], sizes = [2, 32], strides = [1, 1]} : vector<2x128xf32> to vector<2x32xf32>
    %32 = vector.extract_strided_slice %27 {offsets = [0, 96], sizes = [2, 32], strides = [1, 1]} : vector<2x128xf32> to vector<2x32xf32>
    %33 = arith.mulf %30, %17 : vector<2x32xf32>
    %34 = arith.mulf %29, %31 : vector<2x32xf32>
    %35 = arith.addf %33, %34 : vector<2x32xf32>
    %36 = math.tanh %35 : vector<2x32xf32>
    %37 = arith.mulf %32, %36 : vector<2x32xf32>
    %38 = arith.truncf %37 : vector<2x32xf32> to vector<2x32xbf16>
    %cst_19 = arith.constant dense<0.000000e+00> : vector<2x128xf32>
    %39 = tpu.matmul %38, %3, %cst_19 {dimension_numbers = #tpu.dot_dimension_numbers<[1], [0], [0], [1], [0, 0, 1, 1], [], []>} : vector<2x32xbf16>, vector<32x128xbf16>, vector<2x128xf32> -> vector<2x128xf32>
    %40 = vector.broadcast %9 : vector<1x128xf32> to vector<2x128xf32>
    %41 = arith.addf %39, %40 : vector<2x128xf32>
    %42 = arith.truncf %16 : vector<2x32xf32> to vector<2x32xbf16>
    %cst_20 = arith.constant dense<0.000000e+00> : vector<2x128xf32>
    %43 = tpu.matmul %42, %7, %cst_20 {dimension_numbers = #tpu.dot_dimension_numbers<[1], [0], [0], [1], [0, 0, 1, 1], [], []>} : vector<2x32xbf16>, vector<32x128xbf16>, vector<2x128xf32> -> vector<2x128xf32>
    %44 = arith.addf %41, %43 : vector<2x128xf32>
    %45 = arith.negf %44 : vector<2x128xf32>
    %46 = math.exp %45 : vector<2x128xf32>
    %cst_21 = arith.constant 1.000000e+00 : f32
    %47 = vector.broadcast %cst_21 : f32 to vector<2x128xf32>
    %48 = arith.addf %47, %46 : vector<2x128xf32>
    %49 = arith.divf %47, %48 : vector<2x128xf32>
    %50 = math.tanh %44 : vector<2x128xf32>
    %51 = vector.extract_strided_slice %49 {offsets = [0, 0], sizes = [2, 32], strides = [1, 1]} : vector<2x128xf32> to vector<2x32xf32>
    %52 = vector.extract_strided_slice %49 {offsets = [0, 32], sizes = [2, 32], strides = [1, 1]} : vector<2x128xf32> to vector<2x32xf32>
    %53 = vector.extract_strided_slice %50 {offsets = [0, 64], sizes = [2, 32], strides = [1, 1]} : vector<2x128xf32> to vector<2x32xf32>
    %54 = vector.extract_strided_slice %49 {offsets = [0, 96], sizes = [2, 32], strides = [1, 1]} : vector<2x128xf32> to vector<2x32xf32>
    %55 = arith.mulf %52, %18 : vector<2x32xf32>
    %56 = arith.mulf %51, %53 : vector<2x32xf32>
    %57 = arith.addf %55, %56 : vector<2x32xf32>
    %58 = math.tanh %57 : vector<2x32xf32>
    %59 = arith.mulf %54, %58 : vector<2x32xf32>
    %60 = vector.extract_strided_slice %14 {offsets = [2, 0], sizes = [2, 128], strides = [1, 1]} : vector<16x128xf32> to vector<2x128xf32>
    %61 = arith.truncf %37 : vector<2x32xf32> to vector<2x32xbf16>
    %cst_22 = arith.constant dense<0.000000e+00> : vector<2x128xf32>
    %62 = tpu.matmul %61, %5, %cst_22 {dimension_numbers = #tpu.dot_dimension_numbers<[1], [0], [0], [1], [0, 0, 1, 1], [], []>} : vector<2x32xbf16>, vector<32x128xbf16>, vector<2x128xf32> -> vector<2x128xf32>
    %63 = arith.addf %60, %62 : vector<2x128xf32>
    %64 = arith.negf %63 : vector<2x128xf32>
    %65 = math.exp %64 : vector<2x128xf32>
    %cst_23 = arith.constant 1.000000e+00 : f32
    %66 = vector.broadcast %cst_23 : f32 to vector<2x128xf32>
    %67 = arith.addf %66, %65 : vector<2x128xf32>
    %68 = arith.divf %66, %67 : vector<2x128xf32>
    %69 = math.tanh %63 : vector<2x128xf32>
    %70 = vector.extract_strided_slice %68 {offsets = [0, 0], sizes = [2, 32], strides = [1, 1]} : vector<2x128xf32> to vector<2x32xf32>
    %71 = vector.extract_strided_slice %68 {offsets = [0, 32], sizes = [2, 32], strides = [1, 1]} : vector<2x128xf32> to vector<2x32xf32>
    %72 = vector.extract_strided_slice %69 {offsets = [0, 64], sizes = [2, 32], strides = [1, 1]} : vector<2x128xf32> to vector<2x32xf32>
    %73 = vector.extract_strided_slice %68 {offsets = [0, 96], sizes = [2, 32], strides = [1, 1]} : vector<2x128xf32> to vector<2x32xf32>
    %74 = arith.mulf %71, %35 : vector<2x32xf32>
    %75 = arith.mulf %70, %72 : vector<2x32xf32>
    %76 = arith.addf %74, %75 : vector<2x32xf32>
    %77 = math.tanh %76 : vector<2x32xf32>
    %78 = arith.mulf %73, %77 : vector<2x32xf32>
    %79 = arith.truncf %78 : vector<2x32xf32> to vector<2x32xbf16>
    %cst_24 = arith.constant dense<0.000000e+00> : vector<2x128xf32>
    %80 = tpu.matmul %79, %3, %cst_24 {dimension_numbers = #tpu.dot_dimension_numbers<[1], [0], [0], [1], [0, 0, 1, 1], [], []>} : vector<2x32xbf16>, vector<32x128xbf16>, vector<2x128xf32> -> vector<2x128xf32>
    %81 = vector.broadcast %9 : vector<1x128xf32> to vector<2x128xf32>
    %82 = arith.addf %80, %81 : vector<2x128xf32>
    %83 = arith.truncf %59 : vector<2x32xf32> to vector<2x32xbf16>
    %cst_25 = arith.constant dense<0.000000e+00> : vector<2x128xf32>
    %84 = tpu.matmul %83, %7, %cst_25 {dimension_numbers = #tpu.dot_dimension_numbers<[1], [0], [0], [1], [0, 0, 1, 1], [], []>} : vector<2x32xbf16>, vector<32x128xbf16>, vector<2x128xf32> -> vector<2x128xf32>
    %85 = arith.addf %82, %84 : vector<2x128xf32>
    %86 = arith.negf %85 : vector<2x128xf32>
    %87 = math.exp %86 : vector<2x128xf32>
    %cst_26 = arith.constant 1.000000e+00 : f32
    %88 = vector.broadcast %cst_26 : f32 to vector<2x128xf32>
    %89 = arith.addf %88, %87 : vector<2x128xf32>
    %90 = arith.divf %88, %89 : vector<2x128xf32>
    %91 = math.tanh %85 : vector<2x128xf32>
    %92 = vector.extract_strided_slice %90 {offsets = [0, 0], sizes = [2, 32], strides = [1, 1]} : vector<2x128xf32> to vector<2x32xf32>
    %93 = vector.extract_strided_slice %90 {offsets = [0, 32], sizes = [2, 32], strides = [1, 1]} : vector<2x128xf32> to vector<2x32xf32>
    %94 = vector.extract_strided_slice %91 {offsets = [0, 64], sizes = [2, 32], strides = [1, 1]} : vector<2x128xf32> to vector<2x32xf32>
    %95 = vector.extract_strided_slice %90 {offsets = [0, 96], sizes = [2, 32], strides = [1, 1]} : vector<2x128xf32> to vector<2x32xf32>
    %96 = arith.mulf %93, %57 : vector<2x32xf32>
    %97 = arith.mulf %92, %94 : vector<2x32xf32>
    %98 = arith.addf %96, %97 : vector<2x32xf32>
    %99 = math.tanh %98 : vector<2x32xf32>
    %100 = arith.mulf %95, %99 : vector<2x32xf32>
    %101 = vector.extract_strided_slice %14 {offsets = [4, 0], sizes = [2, 128], strides = [1, 1]} : vector<16x128xf32> to vector<2x128xf32>
    %102 = arith.truncf %78 : vector<2x32xf32> to vector<2x32xbf16>
    %cst_27 = arith.constant dense<0.000000e+00> : vector<2x128xf32>
    %103 = tpu.matmul %102, %5, %cst_27 {dimension_numbers = #tpu.dot_dimension_numbers<[1], [0], [0], [1], [0, 0, 1, 1], [], []>} : vector<2x32xbf16>, vector<32x128xbf16>, vector<2x128xf32> -> vector<2x128xf32>
    %104 = arith.addf %101, %103 : vector<2x128xf32>
    %105 = arith.negf %104 : vector<2x128xf32>
    %106 = math.exp %105 : vector<2x128xf32>
    %cst_28 = arith.constant 1.000000e+00 : f32
    %107 = vector.broadcast %cst_28 : f32 to vector<2x128xf32>
    %108 = arith.addf %107, %106 : vector<2x128xf32>
    %109 = arith.divf %107, %108 : vector<2x128xf32>
    %110 = math.tanh %104 : vector<2x128xf32>
    %111 = vector.extract_strided_slice %109 {offsets = [0, 0], sizes = [2, 32], strides = [1, 1]} : vector<2x128xf32> to vector<2x32xf32>
    %112 = vector.extract_strided_slice %109 {offsets = [0, 32], sizes = [2, 32], strides = [1, 1]} : vector<2x128xf32> to vector<2x32xf32>
    %113 = vector.extract_strided_slice %110 {offsets = [0, 64], sizes = [2, 32], strides = [1, 1]} : vector<2x128xf32> to vector<2x32xf32>
    %114 = vector.extract_strided_slice %109 {offsets = [0, 96], sizes = [2, 32], strides = [1, 1]} : vector<2x128xf32> to vector<2x32xf32>
    %115 = arith.mulf %112, %76 : vector<2x32xf32>
    %116 = arith.mulf %111, %113 : vector<2x32xf32>
    %117 = arith.addf %115, %116 : vector<2x32xf32>
    %118 = math.tanh %117 : vector<2x32xf32>
    %119 = arith.mulf %114, %118 : vector<2x32xf32>
    %120 = arith.truncf %119 : vector<2x32xf32> to vector<2x32xbf16>
    %cst_29 = arith.constant dense<0.000000e+00> : vector<2x128xf32>
    %121 = tpu.matmul %120, %3, %cst_29 {dimension_numbers = #tpu.dot_dimension_numbers<[1], [0], [0], [1], [0, 0, 1, 1], [], []>} : vector<2x32xbf16>, vector<32x128xbf16>, vector<2x128xf32> -> vector<2x128xf32>
    %122 = vector.broadcast %9 : vector<1x128xf32> to vector<2x128xf32>
    %123 = arith.addf %121, %122 : vector<2x128xf32>
    %124 = arith.truncf %100 : vector<2x32xf32> to vector<2x32xbf16>
    %cst_30 = arith.constant dense<0.000000e+00> : vector<2x128xf32>
    %125 = tpu.matmul %124, %7, %cst_30 {dimension_numbers = #tpu.dot_dimension_numbers<[1], [0], [0], [1], [0, 0, 1, 1], [], []>} : vector<2x32xbf16>, vector<32x128xbf16>, vector<2x128xf32> -> vector<2x128xf32>
    %126 = arith.addf %123, %125 : vector<2x128xf32>
    %127 = arith.negf %126 : vector<2x128xf32>
    %128 = math.exp %127 : vector<2x128xf32>
    %cst_31 = arith.constant 1.000000e+00 : f32
    %129 = vector.broadcast %cst_31 : f32 to vector<2x128xf32>
    %130 = arith.addf %129, %128 : vector<2x128xf32>
    %131 = arith.divf %129, %130 : vector<2x128xf32>
    %132 = math.tanh %126 : vector<2x128xf32>
    %133 = vector.extract_strided_slice %131 {offsets = [0, 0], sizes = [2, 32], strides = [1, 1]} : vector<2x128xf32> to vector<2x32xf32>
    %134 = vector.extract_strided_slice %131 {offsets = [0, 32], sizes = [2, 32], strides = [1, 1]} : vector<2x128xf32> to vector<2x32xf32>
    %135 = vector.extract_strided_slice %132 {offsets = [0, 64], sizes = [2, 32], strides = [1, 1]} : vector<2x128xf32> to vector<2x32xf32>
    %136 = vector.extract_strided_slice %131 {offsets = [0, 96], sizes = [2, 32], strides = [1, 1]} : vector<2x128xf32> to vector<2x32xf32>
    %137 = arith.mulf %134, %98 : vector<2x32xf32>
    %138 = arith.mulf %133, %135 : vector<2x32xf32>
    %139 = arith.addf %137, %138 : vector<2x32xf32>
    %140 = math.tanh %139 : vector<2x32xf32>
    %141 = arith.mulf %136, %140 : vector<2x32xf32>
    %142 = vector.extract_strided_slice %14 {offsets = [6, 0], sizes = [2, 128], strides = [1, 1]} : vector<16x128xf32> to vector<2x128xf32>
    %143 = arith.truncf %119 : vector<2x32xf32> to vector<2x32xbf16>
    %cst_32 = arith.constant dense<0.000000e+00> : vector<2x128xf32>
    %144 = tpu.matmul %143, %5, %cst_32 {dimension_numbers = #tpu.dot_dimension_numbers<[1], [0], [0], [1], [0, 0, 1, 1], [], []>} : vector<2x32xbf16>, vector<32x128xbf16>, vector<2x128xf32> -> vector<2x128xf32>
    %145 = arith.addf %142, %144 : vector<2x128xf32>
    %146 = arith.negf %145 : vector<2x128xf32>
    %147 = math.exp %146 : vector<2x128xf32>
    %cst_33 = arith.constant 1.000000e+00 : f32
    %148 = vector.broadcast %cst_33 : f32 to vector<2x128xf32>
    %149 = arith.addf %148, %147 : vector<2x128xf32>
    %150 = arith.divf %148, %149 : vector<2x128xf32>
    %151 = math.tanh %145 : vector<2x128xf32>
    %152 = vector.extract_strided_slice %150 {offsets = [0, 0], sizes = [2, 32], strides = [1, 1]} : vector<2x128xf32> to vector<2x32xf32>
    %153 = vector.extract_strided_slice %150 {offsets = [0, 32], sizes = [2, 32], strides = [1, 1]} : vector<2x128xf32> to vector<2x32xf32>
    %154 = vector.extract_strided_slice %151 {offsets = [0, 64], sizes = [2, 32], strides = [1, 1]} : vector<2x128xf32> to vector<2x32xf32>
    %155 = vector.extract_strided_slice %150 {offsets = [0, 96], sizes = [2, 32], strides = [1, 1]} : vector<2x128xf32> to vector<2x32xf32>
    %156 = arith.mulf %153, %117 : vector<2x32xf32>
    %157 = arith.mulf %152, %154 : vector<2x32xf32>
    %158 = arith.addf %156, %157 : vector<2x32xf32>
    %159 = math.tanh %158 : vector<2x32xf32>
    %160 = arith.mulf %155, %159 : vector<2x32xf32>
    %161 = arith.truncf %160 : vector<2x32xf32> to vector<2x32xbf16>
    %cst_34 = arith.constant dense<0.000000e+00> : vector<2x128xf32>
    %162 = tpu.matmul %161, %3, %cst_34 {dimension_numbers = #tpu.dot_dimension_numbers<[1], [0], [0], [1], [0, 0, 1, 1], [], []>} : vector<2x32xbf16>, vector<32x128xbf16>, vector<2x128xf32> -> vector<2x128xf32>
    %163 = vector.broadcast %9 : vector<1x128xf32> to vector<2x128xf32>
    %164 = arith.addf %162, %163 : vector<2x128xf32>
    %165 = arith.truncf %141 : vector<2x32xf32> to vector<2x32xbf16>
    %cst_35 = arith.constant dense<0.000000e+00> : vector<2x128xf32>
    %166 = tpu.matmul %165, %7, %cst_35 {dimension_numbers = #tpu.dot_dimension_numbers<[1], [0], [0], [1], [0, 0, 1, 1], [], []>} : vector<2x32xbf16>, vector<32x128xbf16>, vector<2x128xf32> -> vector<2x128xf32>
    %167 = arith.addf %164, %166 : vector<2x128xf32>
    %168 = arith.negf %167 : vector<2x128xf32>
    %169 = math.exp %168 : vector<2x128xf32>
    %cst_36 = arith.constant 1.000000e+00 : f32
    %170 = vector.broadcast %cst_36 : f32 to vector<2x128xf32>
    %171 = arith.addf %170, %169 : vector<2x128xf32>
    %172 = arith.divf %170, %171 : vector<2x128xf32>
    %173 = math.tanh %167 : vector<2x128xf32>
    %174 = vector.extract_strided_slice %172 {offsets = [0, 0], sizes = [2, 32], strides = [1, 1]} : vector<2x128xf32> to vector<2x32xf32>
    %175 = vector.extract_strided_slice %172 {offsets = [0, 32], sizes = [2, 32], strides = [1, 1]} : vector<2x128xf32> to vector<2x32xf32>
    %176 = vector.extract_strided_slice %173 {offsets = [0, 64], sizes = [2, 32], strides = [1, 1]} : vector<2x128xf32> to vector<2x32xf32>
    %177 = vector.extract_strided_slice %172 {offsets = [0, 96], sizes = [2, 32], strides = [1, 1]} : vector<2x128xf32> to vector<2x32xf32>
    %178 = arith.mulf %175, %139 : vector<2x32xf32>
    %179 = arith.mulf %174, %176 : vector<2x32xf32>
    %180 = arith.addf %178, %179 : vector<2x32xf32>
    %181 = math.tanh %180 : vector<2x32xf32>
    %182 = arith.mulf %177, %181 : vector<2x32xf32>
    %183 = vector.extract_strided_slice %14 {offsets = [8, 0], sizes = [2, 128], strides = [1, 1]} : vector<16x128xf32> to vector<2x128xf32>
    %184 = arith.truncf %160 : vector<2x32xf32> to vector<2x32xbf16>
    %cst_37 = arith.constant dense<0.000000e+00> : vector<2x128xf32>
    %185 = tpu.matmul %184, %5, %cst_37 {dimension_numbers = #tpu.dot_dimension_numbers<[1], [0], [0], [1], [0, 0, 1, 1], [], []>} : vector<2x32xbf16>, vector<32x128xbf16>, vector<2x128xf32> -> vector<2x128xf32>
    %186 = arith.addf %183, %185 : vector<2x128xf32>
    %187 = arith.negf %186 : vector<2x128xf32>
    %188 = math.exp %187 : vector<2x128xf32>
    %cst_38 = arith.constant 1.000000e+00 : f32
    %189 = vector.broadcast %cst_38 : f32 to vector<2x128xf32>
    %190 = arith.addf %189, %188 : vector<2x128xf32>
    %191 = arith.divf %189, %190 : vector<2x128xf32>
    %192 = math.tanh %186 : vector<2x128xf32>
    %193 = vector.extract_strided_slice %191 {offsets = [0, 0], sizes = [2, 32], strides = [1, 1]} : vector<2x128xf32> to vector<2x32xf32>
    %194 = vector.extract_strided_slice %191 {offsets = [0, 32], sizes = [2, 32], strides = [1, 1]} : vector<2x128xf32> to vector<2x32xf32>
    %195 = vector.extract_strided_slice %192 {offsets = [0, 64], sizes = [2, 32], strides = [1, 1]} : vector<2x128xf32> to vector<2x32xf32>
    %196 = vector.extract_strided_slice %191 {offsets = [0, 96], sizes = [2, 32], strides = [1, 1]} : vector<2x128xf32> to vector<2x32xf32>
    %197 = arith.mulf %194, %158 : vector<2x32xf32>
    %198 = arith.mulf %193, %195 : vector<2x32xf32>
    %199 = arith.addf %197, %198 : vector<2x32xf32>
    %200 = math.tanh %199 : vector<2x32xf32>
    %201 = arith.mulf %196, %200 : vector<2x32xf32>
    %202 = arith.truncf %201 : vector<2x32xf32> to vector<2x32xbf16>
    %cst_39 = arith.constant dense<0.000000e+00> : vector<2x128xf32>
    %203 = tpu.matmul %202, %3, %cst_39 {dimension_numbers = #tpu.dot_dimension_numbers<[1], [0], [0], [1], [0, 0, 1, 1], [], []>} : vector<2x32xbf16>, vector<32x128xbf16>, vector<2x128xf32> -> vector<2x128xf32>
    %204 = vector.broadcast %9 : vector<1x128xf32> to vector<2x128xf32>
    %205 = arith.addf %203, %204 : vector<2x128xf32>
    %206 = arith.truncf %182 : vector<2x32xf32> to vector<2x32xbf16>
    %cst_40 = arith.constant dense<0.000000e+00> : vector<2x128xf32>
    %207 = tpu.matmul %206, %7, %cst_40 {dimension_numbers = #tpu.dot_dimension_numbers<[1], [0], [0], [1], [0, 0, 1, 1], [], []>} : vector<2x32xbf16>, vector<32x128xbf16>, vector<2x128xf32> -> vector<2x128xf32>
    %208 = arith.addf %205, %207 : vector<2x128xf32>
    %209 = arith.negf %208 : vector<2x128xf32>
    %210 = math.exp %209 : vector<2x128xf32>
    %cst_41 = arith.constant 1.000000e+00 : f32
    %211 = vector.broadcast %cst_41 : f32 to vector<2x128xf32>
    %212 = arith.addf %211, %210 : vector<2x128xf32>
    %213 = arith.divf %211, %212 : vector<2x128xf32>
    %214 = math.tanh %208 : vector<2x128xf32>
    %215 = vector.extract_strided_slice %213 {offsets = [0, 0], sizes = [2, 32], strides = [1, 1]} : vector<2x128xf32> to vector<2x32xf32>
    %216 = vector.extract_strided_slice %213 {offsets = [0, 32], sizes = [2, 32], strides = [1, 1]} : vector<2x128xf32> to vector<2x32xf32>
    %217 = vector.extract_strided_slice %214 {offsets = [0, 64], sizes = [2, 32], strides = [1, 1]} : vector<2x128xf32> to vector<2x32xf32>
    %218 = vector.extract_strided_slice %213 {offsets = [0, 96], sizes = [2, 32], strides = [1, 1]} : vector<2x128xf32> to vector<2x32xf32>
    %219 = arith.mulf %216, %180 : vector<2x32xf32>
    %220 = arith.mulf %215, %217 : vector<2x32xf32>
    %221 = arith.addf %219, %220 : vector<2x32xf32>
    %222 = math.tanh %221 : vector<2x32xf32>
    %223 = arith.mulf %218, %222 : vector<2x32xf32>
    %224 = vector.extract_strided_slice %14 {offsets = [10, 0], sizes = [2, 128], strides = [1, 1]} : vector<16x128xf32> to vector<2x128xf32>
    %225 = arith.truncf %201 : vector<2x32xf32> to vector<2x32xbf16>
    %cst_42 = arith.constant dense<0.000000e+00> : vector<2x128xf32>
    %226 = tpu.matmul %225, %5, %cst_42 {dimension_numbers = #tpu.dot_dimension_numbers<[1], [0], [0], [1], [0, 0, 1, 1], [], []>} : vector<2x32xbf16>, vector<32x128xbf16>, vector<2x128xf32> -> vector<2x128xf32>
    %227 = arith.addf %224, %226 : vector<2x128xf32>
    %228 = arith.negf %227 : vector<2x128xf32>
    %229 = math.exp %228 : vector<2x128xf32>
    %cst_43 = arith.constant 1.000000e+00 : f32
    %230 = vector.broadcast %cst_43 : f32 to vector<2x128xf32>
    %231 = arith.addf %230, %229 : vector<2x128xf32>
    %232 = arith.divf %230, %231 : vector<2x128xf32>
    %233 = math.tanh %227 : vector<2x128xf32>
    %234 = vector.extract_strided_slice %232 {offsets = [0, 0], sizes = [2, 32], strides = [1, 1]} : vector<2x128xf32> to vector<2x32xf32>
    %235 = vector.extract_strided_slice %232 {offsets = [0, 32], sizes = [2, 32], strides = [1, 1]} : vector<2x128xf32> to vector<2x32xf32>
    %236 = vector.extract_strided_slice %233 {offsets = [0, 64], sizes = [2, 32], strides = [1, 1]} : vector<2x128xf32> to vector<2x32xf32>
    %237 = vector.extract_strided_slice %232 {offsets = [0, 96], sizes = [2, 32], strides = [1, 1]} : vector<2x128xf32> to vector<2x32xf32>
    %238 = arith.mulf %235, %199 : vector<2x32xf32>
    %239 = arith.mulf %234, %236 : vector<2x32xf32>
    %240 = arith.addf %238, %239 : vector<2x32xf32>
    %241 = math.tanh %240 : vector<2x32xf32>
    %242 = arith.mulf %237, %241 : vector<2x32xf32>
    %243 = arith.truncf %242 : vector<2x32xf32> to vector<2x32xbf16>
    %cst_44 = arith.constant dense<0.000000e+00> : vector<2x128xf32>
    %244 = tpu.matmul %243, %3, %cst_44 {dimension_numbers = #tpu.dot_dimension_numbers<[1], [0], [0], [1], [0, 0, 1, 1], [], []>} : vector<2x32xbf16>, vector<32x128xbf16>, vector<2x128xf32> -> vector<2x128xf32>
    %245 = vector.broadcast %9 : vector<1x128xf32> to vector<2x128xf32>
    %246 = arith.addf %244, %245 : vector<2x128xf32>
    %247 = arith.truncf %223 : vector<2x32xf32> to vector<2x32xbf16>
    %cst_45 = arith.constant dense<0.000000e+00> : vector<2x128xf32>
    %248 = tpu.matmul %247, %7, %cst_45 {dimension_numbers = #tpu.dot_dimension_numbers<[1], [0], [0], [1], [0, 0, 1, 1], [], []>} : vector<2x32xbf16>, vector<32x128xbf16>, vector<2x128xf32> -> vector<2x128xf32>
    %249 = arith.addf %246, %248 : vector<2x128xf32>
    %250 = arith.negf %249 : vector<2x128xf32>
    %251 = math.exp %250 : vector<2x128xf32>
    %cst_46 = arith.constant 1.000000e+00 : f32
    %252 = vector.broadcast %cst_46 : f32 to vector<2x128xf32>
    %253 = arith.addf %252, %251 : vector<2x128xf32>
    %254 = arith.divf %252, %253 : vector<2x128xf32>
    %255 = math.tanh %249 : vector<2x128xf32>
    %256 = vector.extract_strided_slice %254 {offsets = [0, 0], sizes = [2, 32], strides = [1, 1]} : vector<2x128xf32> to vector<2x32xf32>
    %257 = vector.extract_strided_slice %254 {offsets = [0, 32], sizes = [2, 32], strides = [1, 1]} : vector<2x128xf32> to vector<2x32xf32>
    %258 = vector.extract_strided_slice %255 {offsets = [0, 64], sizes = [2, 32], strides = [1, 1]} : vector<2x128xf32> to vector<2x32xf32>
    %259 = vector.extract_strided_slice %254 {offsets = [0, 96], sizes = [2, 32], strides = [1, 1]} : vector<2x128xf32> to vector<2x32xf32>
    %260 = arith.mulf %257, %221 : vector<2x32xf32>
    %261 = arith.mulf %256, %258 : vector<2x32xf32>
    %262 = arith.addf %260, %261 : vector<2x32xf32>
    %263 = math.tanh %262 : vector<2x32xf32>
    %264 = arith.mulf %259, %263 : vector<2x32xf32>
    %265 = vector.extract_strided_slice %14 {offsets = [12, 0], sizes = [2, 128], strides = [1, 1]} : vector<16x128xf32> to vector<2x128xf32>
    %266 = arith.truncf %242 : vector<2x32xf32> to vector<2x32xbf16>
    %cst_47 = arith.constant dense<0.000000e+00> : vector<2x128xf32>
    %267 = tpu.matmul %266, %5, %cst_47 {dimension_numbers = #tpu.dot_dimension_numbers<[1], [0], [0], [1], [0, 0, 1, 1], [], []>} : vector<2x32xbf16>, vector<32x128xbf16>, vector<2x128xf32> -> vector<2x128xf32>
    %268 = arith.addf %265, %267 : vector<2x128xf32>
    %269 = arith.negf %268 : vector<2x128xf32>
    %270 = math.exp %269 : vector<2x128xf32>
    %cst_48 = arith.constant 1.000000e+00 : f32
    %271 = vector.broadcast %cst_48 : f32 to vector<2x128xf32>
    %272 = arith.addf %271, %270 : vector<2x128xf32>
    %273 = arith.divf %271, %272 : vector<2x128xf32>
    %274 = math.tanh %268 : vector<2x128xf32>
    %275 = vector.extract_strided_slice %273 {offsets = [0, 0], sizes = [2, 32], strides = [1, 1]} : vector<2x128xf32> to vector<2x32xf32>
    %276 = vector.extract_strided_slice %273 {offsets = [0, 32], sizes = [2, 32], strides = [1, 1]} : vector<2x128xf32> to vector<2x32xf32>
    %277 = vector.extract_strided_slice %274 {offsets = [0, 64], sizes = [2, 32], strides = [1, 1]} : vector<2x128xf32> to vector<2x32xf32>
    %278 = vector.extract_strided_slice %273 {offsets = [0, 96], sizes = [2, 32], strides = [1, 1]} : vector<2x128xf32> to vector<2x32xf32>
    %279 = arith.mulf %276, %240 : vector<2x32xf32>
    %280 = arith.mulf %275, %277 : vector<2x32xf32>
    %281 = arith.addf %279, %280 : vector<2x32xf32>
    %282 = math.tanh %281 : vector<2x32xf32>
    %283 = arith.mulf %278, %282 : vector<2x32xf32>
    %284 = arith.truncf %283 : vector<2x32xf32> to vector<2x32xbf16>
    %cst_49 = arith.constant dense<0.000000e+00> : vector<2x128xf32>
    %285 = tpu.matmul %284, %3, %cst_49 {dimension_numbers = #tpu.dot_dimension_numbers<[1], [0], [0], [1], [0, 0, 1, 1], [], []>} : vector<2x32xbf16>, vector<32x128xbf16>, vector<2x128xf32> -> vector<2x128xf32>
    %286 = vector.broadcast %9 : vector<1x128xf32> to vector<2x128xf32>
    %287 = arith.addf %285, %286 : vector<2x128xf32>
    %288 = arith.truncf %264 : vector<2x32xf32> to vector<2x32xbf16>
    %cst_50 = arith.constant dense<0.000000e+00> : vector<2x128xf32>
    %289 = tpu.matmul %288, %7, %cst_50 {dimension_numbers = #tpu.dot_dimension_numbers<[1], [0], [0], [1], [0, 0, 1, 1], [], []>} : vector<2x32xbf16>, vector<32x128xbf16>, vector<2x128xf32> -> vector<2x128xf32>
    %290 = arith.addf %287, %289 : vector<2x128xf32>
    %291 = arith.negf %290 : vector<2x128xf32>
    %292 = math.exp %291 : vector<2x128xf32>
    %cst_51 = arith.constant 1.000000e+00 : f32
    %293 = vector.broadcast %cst_51 : f32 to vector<2x128xf32>
    %294 = arith.addf %293, %292 : vector<2x128xf32>
    %295 = arith.divf %293, %294 : vector<2x128xf32>
    %296 = math.tanh %290 : vector<2x128xf32>
    %297 = vector.extract_strided_slice %295 {offsets = [0, 0], sizes = [2, 32], strides = [1, 1]} : vector<2x128xf32> to vector<2x32xf32>
    %298 = vector.extract_strided_slice %295 {offsets = [0, 32], sizes = [2, 32], strides = [1, 1]} : vector<2x128xf32> to vector<2x32xf32>
    %299 = vector.extract_strided_slice %296 {offsets = [0, 64], sizes = [2, 32], strides = [1, 1]} : vector<2x128xf32> to vector<2x32xf32>
    %300 = vector.extract_strided_slice %295 {offsets = [0, 96], sizes = [2, 32], strides = [1, 1]} : vector<2x128xf32> to vector<2x32xf32>
    %301 = arith.mulf %298, %262 : vector<2x32xf32>
    %302 = arith.mulf %297, %299 : vector<2x32xf32>
    %303 = arith.addf %301, %302 : vector<2x32xf32>
    %304 = math.tanh %303 : vector<2x32xf32>
    %305 = arith.mulf %300, %304 : vector<2x32xf32>
    %306 = vector.extract_strided_slice %14 {offsets = [14, 0], sizes = [2, 128], strides = [1, 1]} : vector<16x128xf32> to vector<2x128xf32>
    %307 = arith.truncf %283 : vector<2x32xf32> to vector<2x32xbf16>
    %cst_52 = arith.constant dense<0.000000e+00> : vector<2x128xf32>
    %308 = tpu.matmul %307, %5, %cst_52 {dimension_numbers = #tpu.dot_dimension_numbers<[1], [0], [0], [1], [0, 0, 1, 1], [], []>} : vector<2x32xbf16>, vector<32x128xbf16>, vector<2x128xf32> -> vector<2x128xf32>
    %309 = arith.addf %306, %308 : vector<2x128xf32>
    %310 = arith.negf %309 : vector<2x128xf32>
    %311 = math.exp %310 : vector<2x128xf32>
    %cst_53 = arith.constant 1.000000e+00 : f32
    %312 = vector.broadcast %cst_53 : f32 to vector<2x128xf32>
    %313 = arith.addf %312, %311 : vector<2x128xf32>
    %314 = arith.divf %312, %313 : vector<2x128xf32>
    %315 = math.tanh %309 : vector<2x128xf32>
    %316 = vector.extract_strided_slice %314 {offsets = [0, 0], sizes = [2, 32], strides = [1, 1]} : vector<2x128xf32> to vector<2x32xf32>
    %317 = vector.extract_strided_slice %314 {offsets = [0, 32], sizes = [2, 32], strides = [1, 1]} : vector<2x128xf32> to vector<2x32xf32>
    %318 = vector.extract_strided_slice %315 {offsets = [0, 64], sizes = [2, 32], strides = [1, 1]} : vector<2x128xf32> to vector<2x32xf32>
    %319 = vector.extract_strided_slice %314 {offsets = [0, 96], sizes = [2, 32], strides = [1, 1]} : vector<2x128xf32> to vector<2x32xf32>
    %320 = arith.mulf %317, %281 : vector<2x32xf32>
    %321 = arith.mulf %316, %318 : vector<2x32xf32>
    %322 = arith.addf %320, %321 : vector<2x32xf32>
    %323 = math.tanh %322 : vector<2x32xf32>
    %324 = arith.mulf %319, %323 : vector<2x32xf32>
    %325 = arith.truncf %324 : vector<2x32xf32> to vector<2x32xbf16>
    %cst_54 = arith.constant dense<0.000000e+00> : vector<2x128xf32>
    %326 = tpu.matmul %325, %3, %cst_54 {dimension_numbers = #tpu.dot_dimension_numbers<[1], [0], [0], [1], [0, 0, 1, 1], [], []>} : vector<2x32xbf16>, vector<32x128xbf16>, vector<2x128xf32> -> vector<2x128xf32>
    %327 = vector.broadcast %9 : vector<1x128xf32> to vector<2x128xf32>
    %328 = arith.addf %326, %327 : vector<2x128xf32>
    %329 = arith.truncf %305 : vector<2x32xf32> to vector<2x32xbf16>
    %cst_55 = arith.constant dense<0.000000e+00> : vector<2x128xf32>
    %330 = tpu.matmul %329, %7, %cst_55 {dimension_numbers = #tpu.dot_dimension_numbers<[1], [0], [0], [1], [0, 0, 1, 1], [], []>} : vector<2x32xbf16>, vector<32x128xbf16>, vector<2x128xf32> -> vector<2x128xf32>
    %331 = arith.addf %328, %330 : vector<2x128xf32>
    %332 = arith.negf %331 : vector<2x128xf32>
    %333 = math.exp %332 : vector<2x128xf32>
    %cst_56 = arith.constant 1.000000e+00 : f32
    %334 = vector.broadcast %cst_56 : f32 to vector<2x128xf32>
    %335 = arith.addf %334, %333 : vector<2x128xf32>
    %336 = arith.divf %334, %335 : vector<2x128xf32>
    %337 = math.tanh %331 : vector<2x128xf32>
    %338 = vector.extract_strided_slice %336 {offsets = [0, 0], sizes = [2, 32], strides = [1, 1]} : vector<2x128xf32> to vector<2x32xf32>
    %339 = vector.extract_strided_slice %336 {offsets = [0, 32], sizes = [2, 32], strides = [1, 1]} : vector<2x128xf32> to vector<2x32xf32>
    %340 = vector.extract_strided_slice %337 {offsets = [0, 64], sizes = [2, 32], strides = [1, 1]} : vector<2x128xf32> to vector<2x32xf32>
    %341 = vector.extract_strided_slice %336 {offsets = [0, 96], sizes = [2, 32], strides = [1, 1]} : vector<2x128xf32> to vector<2x32xf32>
    %342 = arith.mulf %339, %303 : vector<2x32xf32>
    %343 = arith.mulf %338, %340 : vector<2x32xf32>
    %344 = arith.addf %342, %343 : vector<2x32xf32>
    %345 = math.tanh %344 : vector<2x32xf32>
    %346 = arith.mulf %341, %345 : vector<2x32xf32>
    %c0_57 = arith.constant 0 : index
    %c0_58 = arith.constant 0 : index
    %347 = vector.load %arg7[%c0_57, %c0_58] : memref<32x8xf32, #tpu.memory_space<vmem>>, vector<32x8xf32>
    %cst_59 = arith.constant dense<0.000000e+00> : vector<2x8xf32>
    %348 = tpu.matmul %346, %347, %cst_59 {dimension_numbers = #tpu.dot_dimension_numbers<[1], [0], [0], [1], [0, 0, 1, 1], [], []>} : vector<2x32xf32>, vector<32x8xf32>, vector<2x8xf32> -> vector<2x8xf32>
    %c0_60 = arith.constant 0 : index
    %c0_61 = arith.constant 0 : index
    %349 = vector.load %arg8[%c0_60, %c0_61] : memref<1x8xf32, #tpu.memory_space<vmem>>, vector<1x8xf32>
    %350 = vector.broadcast %349 : vector<1x8xf32> to vector<2x8xf32>
    %351 = arith.addf %348, %350 : vector<2x8xf32>
    %c0_62 = arith.constant 0 : index
    %c0_63 = arith.constant 0 : index
    %352 = vector.load %arg9[%c0_62, %c0_63] : memref<2x8xf32, #tpu.memory_space<vmem>>, vector<2x8xf32>
    tpu.vector_store %arg9[%c0_62, %c0_63], %351 {strides = array<i32>} : memref<2x8xf32, #tpu.memory_space<vmem>>, vector<2x8xf32>,
    return
  }
}

</mosaic_0001>

<bundles_post_ra>
// kernel: tpu_custom_call.1
= control target key start
LH: loop header
LB: loop body
LE: loop exit
PB: predicated region body
PF: predicated region fallthrough
CT: control target
= control target key end

     0   :  { %14 = vsyncpa [#allocation3], 0  ;;  %s1848_s0 = inlined_call_operand.vmem [shape: f32[16,4], index: 0, kind: input, shape index: {}]   ;;  %s1849_s1 = inlined_call_operand.vmem [shape: f32[4,128], index: 1, kind: input, shape index: {}]   ;;  %s1850_s2 = inlined_call_operand.vmem [shape: f32[32,128], index: 2, kind: input, shape index: {}]   ;;  %s1851_s3 = inlined_call_operand.vmem [shape: f32[1,128], index: 3, kind: input, shape index: {}]   ;;  %s1852_s4 = inlined_call_operand.hbm [shape: f32[32,128], index: 4, kind: input, shape index: {}]   ;;  %s1853_s5 = inlined_call_operand.hbm [shape: f32[32,128], index: 5, kind: input, shape index: {}]   ;;  %s1854_s6 = inlined_call_operand.vmem [shape: f32[1,128], index: 6, kind: input, shape index: {}]   ;;  %s1855_s7 = inlined_call_operand.vmem [shape: f32[32,8], index: 7, kind: input, shape index: {}]   ;;  %s1856_s8 = inlined_call_operand.vmem [shape: f32[1,8], index: 8, kind: input, shape index: {}]   ;;  %s1857_s9 = inlined_call_operand.hbm [shape: f32[2,8], index: 9, kind: output, shape index: {}]  }
   0x1   :  { %15 = vsyncpa [#allocation6], 0 }
   0x2   :  { %16 = vsyncpa [#allocation4], 0  ;;  %s29_s11 = sshll.u32 %s1852_s4, 4  ;;  %s1504_s12 = smov [#allocation2]   ;;  %s30_s11 = int_to_ptr.hbm [resolvable:$true] %s29_s11 }
   0x3   :  { %s31_s13 = sshll.u32 %s1504_s12, 4  ;;  %s42_s16 = sshll.u32 %s1853_s5, 4  ;;  %s32_s13 = int_to_ptr.vmem [resolvable:$true] %s31_s13  ;;  %s43_s16 = int_to_ptr.hbm [resolvable:$true] %s42_s16 }
   0x4   :  { %s1505_s17 = smov 128   ;;  %s1506_s18 = smov 8  }
   0x5   :  { %37 = dma.hbm_to_vmem [thread:$0]  %s30_s11, 512, %s32_s13, [#allocation3], %s1505_s17, %s1505_s17, %s1506_s18  }
   0x6   :  { %s1507_s19 = smov [#allocation5]  }
   0x7   :  { %s44_s20 = sshll.u32 %s1507_s19, 4  ;;  %s45_s20 = int_to_ptr.vmem [resolvable:$true] %s44_s20 }
   0x8   :  { %50 = dma.hbm_to_vmem [thread:$0]  %s43_s16, 512, %s45_s20, [#allocation6], %s1505_s17, %s1505_s17, %s1506_s18  }
   0x9   :  { %1498 = dma.done.wait [#allocation3], 512  }
   0xa   :  { %1499 = vsyncadd [#allocation3], 4294966784 }
   0xb   :  { %1500 = dma.done.wait [#allocation6], 512  }
   0xc   :  { %1501 = vsyncadd [#allocation6], 4294966784  ;;  %v76_v0 = vld [vmem:[%s1850_s2 + $0x10] sm:$0xff]  ;;  %v77_v1 = vld [vmem:[%s1850_s2 + $0x18] sm:$0xff]  ;;  %vm98_vm0 = vcmask 1041408   ;;  %vm94_vm1 = vcmask 31744  }
   0xd   :  { %v66_v2 = vld [vmem:[%s1849_s1] sm:$0xf]  ;;  %v1577_v3 = vpack.c.bf16 %v77_v1, %v76_v0  ;;  %v89_v6 = vld [vmem:[%s1848_s0 + $0x8] sm:$0xff]  ;;  %v1508_v12 = vmov 0   ;;  %v70_v39 = vld [vmem:[#allocation2 + $0x10] sm:$0xff]  ;;  %vm116_vm6 = vcmask 261120  }
   0xe   :  { %v67_v4 = vpack.c.bf16 %v66_v2, %v66_v2  ;;  %v88_v5 = vld [vmem:[%s1848_s0] sm:$0xff]  ;;  %v75_v8 = vld [vmem:[%s1850_s2 + $0x8] sm:$0xff]  ;;  %v71_v40 = vld [vmem:[#allocation2 + $0x18] sm:$0xff]  ;;  %s1511_s5 = smov [#allocation7]   ;;  %s1235_s27 = sshll.u32 %s1857_s9, 4  ;;  %s1236_s27 = int_to_ptr.hbm [resolvable:$true] %s1235_s27 }
   0xf   :  { %v74_v7 = vld [vmem:[%s1850_s2] sm:$0xff]  ;;  %126 = vmatpush.bf16.msra.mxu1 %v1577_v3  ;;  %v90_v10 = vpack.c.bf16 %v89_v6, %v88_v5  ;;  %s1509_s2 = smov 64   ;;  %v82_v41 = vld [vmem:[#allocation5 + $0x10] sm:$0xff]  ;;  %v1613_v42 = vpack.c.bf16 %v71_v40, %v70_v39  ;;  %v83_v43 = vld [vmem:[#allocation5 + $0x18] sm:$0xff]  ;;  %s1233_s24 = sshll.u32 %s1511_s5, 4  ;;  %s1234_s24 = int_to_ptr.vmem [resolvable:$true] %s1233_s24 }
  0x10   :  { %v100_v9 = vsel %vm98_vm0, %v67_v4, 0  ;;  %v1592_v11 = vpack.c.bf16 %v75_v8, %v74_v7  ;;  %v1601_v13 = vld [vmem:[%s1851_s3] ss:$0 sm:$0xff]  ;;  %s1510_s3 = smov 32   ;;  %v69_v45 = vld [vmem:[#allocation2 + $0x8] sm:$0xff]  ;;  %v1615_v46 = vpack.c.bf16 %v83_v43, %v82_v41 }
  0x11   :  { %109 = vmatpush.bf16.msra.mxu0 %v100_v9  ;;  %v68_v44 = vld [vmem:[#allocation2] sm:$0xff]  ;;  %v81_v48 = vld [vmem:[#allocation5 + $0x8] sm:$0xff]  ;;  %187 = vmatpush.bf16.msra.mxu2 %v1613_v42 }
  0x12   :  { %v80_v47 = vld [vmem:[#allocation5] sm:$0xff]  ;;  %v1618_v49 = vpack.c.bf16 %v69_v45, %v68_v44  ;;  %200 = vmatpush.bf16.msra.mxu3 %v1615_v46 }
  0x13   :  { %127 = vmatpush.bf16.msra.mxu1 %v1592_v11  ;;  %v1622_v50 = vpack.c.bf16 %v81_v48, %v80_v47  ;;  %v1651_v61 = vld [vmem:[%s1854_s6] ss:$0 sm:$0xff] }
  0x14   :  { %1246 = vmatmul.msk.bf16.vlgmr.msra.gmra.mxu0 %vm94_vm1, %v90_v10 }
  0x15   :  { %251 = vmatpush.bf16.msrb.mxu0 %v1577_v3  ;;  %188 = vmatpush.bf16.msra.mxu2 %v1618_v49 }
  0x16   :  { %128 = vmatmul.bf16.vlgmr.msra.gmra.mxu1 %v1508_v12  ;;  %201 = vmatpush.bf16.msra.mxu3 %v1622_v50 }
  0x17   :  { %316 = vmatpush.bf16.msrb.mxu1 %v1613_v42 }
  0x19   :  { %252 = vmatpush.bf16.msrb.mxu0 %v1592_v11  ;;  %336 = vmatpush.bf16.msrb.mxu2 %v1615_v46 }
  0x1a   :  { %387 = vmatpush.bf16.msrb.mxu3 %v1577_v3 }
  0x1b   :  { %317 = vmatpush.bf16.msrb.mxu1 %v1618_v49  ;;  %202 = vmatmul.bf16.vlgmr.msra.gmra.mxu3 %v1508_v12 }
  0x1d   :  { %452 = vmatpush.bf16.msra.mxu0 %v1613_v42  ;;  %337 = vmatpush.bf16.msrb.mxu2 %v1622_v50 }
  0x1e   :  { %388 = vmatpush.bf16.msrb.mxu3 %v1592_v11 }
  0x1f   :  { %472 = vmatpush.bf16.msra.mxu1 %v1615_v46 }
  0x21   :  { %453 = vmatpush.bf16.msra.mxu0 %v1618_v49 }
  0x22   :  { %588 = vmatpush.bf16.msra.mxu3 %v1613_v42 }
  0x23   :  { %473 = vmatpush.bf16.msra.mxu1 %v1622_v50 }
  0x26   :  { %589 = vmatpush.bf16.msra.mxu3 %v1618_v49 }
  0x91   :  { %v111_v14 = vpop.f32.mrf.mxu0 }
  0x92   :  { %v1604_v15 = vadd.f32 %v1601_v13, %v111_v14 }
  0x93   :  { %v129_v16 = vpop.f32.mrf.mxu1 }
  0x94   :  { %v133_v17 = vadd.f32 %v129_v16, %v1604_v15 }
  0x96   :  { %1297 = vtanh.f32 %v133_v17  ;;  %v1247_v20 = vmul.f32 -1.442695, %v133_v17 }
  0x98   :  { %1299 = vpow2.f32 %v1247_v20 }
  0x99   :  { %v1645_v57 = vpop.f32.mrf.mxu0 }
  0x9b   :  { %v131_v18 = vpop.f32.mrf.mxu1 }
  0x9c   :  { %v1298_v19 = vpop.eup %1297 }
  0x9d   :  { %156 = vrot.lane.b32.xlu0 %v1298_v19, %s1509_s2 }
  0x9e   :  { %v1300_v21 = vpop.eup %1299  ;;  %v203_v55 = vpop.f32.mrf.mxu3 }
  0x9f   :  { %v137_v22 = vadd.f32 1.0, %v1300_v21 }
  0xa1   :  { %1301 = vrcp.f32 %v137_v22  ;;  %v149_v28 = vand.u32 2147483648, %v137_v22  ;;  %vm143_vm3 = vweird.f32 %v137_v22  ;;  %v147_v29 = vand.u32 2147483647, %v137_v22 }
  0xa3   :  { %v150_v31 = vor.u32 1.1754944e-38, %v149_v28  ;;  %vm148_vm5 = vcmp.eq.f32.partialorder %v147_v29, 8.507059e+37 }
  0xa6   :  { %v205_v56 = vpop.f32.mrf.mxu3 }
  0xa7   :  { %v1302_v23 = vpop.eup %1301 }
  0xa8   :  { %v139_v24 = vmul.f32 %v1302_v23, %v137_v22  ;;  %vm144_vm2 = vweird.f32 %v1302_v23 }
  0xa9   :  { %vm145_vm4 = vmor %vm143_vm3, %vm144_vm2 }
  0xaa   :  { %v140_v25 = vsub.f32 1.0, %v139_v24 }
  0xac   :  { %v141_v26 = vmul.f32 %v1302_v23, %v140_v25 }
  0xae   :  { %v142_v27 = vadd.f32 %v1302_v23, %v141_v26 }
  0xb0   :  { %v146_v30 = vsel %vm145_vm4, %v1302_v23, %v142_v27 }
  0xb1   :  { %v151_v33 = vsel %vm148_vm5, %v150_v31, %v146_v30 }
  0xb2   :  { %v154_v35 = vmul.f32 0.0, %v151_v33 }
 0x10f   :  { %v157_v32 = vpop.permute.xlu0 %156 }
 0x110   :  { %v159_v34 = vmul.f32 %v157_v32, %v151_v33 }
 0x112   :  { %161 = vrot.lane.b32.xlu0 %v159_v34, %s1510_s3 }
 0x184   :  { %v162_v36 = vpop.permute.xlu0 %161 }
 0x185   :  { %v1609_v37 = vadd.f32 %v162_v36, %v154_v35 }
 0x187   :  { %1303 = vtanh.f32 %v1609_v37  ;;  %v283_v40 = vrot.slane %v1609_v37, 6 }
 0x18d   :  { %v1304_v38 = vpop.eup %1303 }
 0x18e   :  { %167 = vrot.lane.b32.xlu1 %v1304_v38, %s1509_s2 }
 0x200   :  { %v168_v51 = vpop.permute.xlu1 %167 }
 0x201   :  { %v170_v52 = vmul.f32 %v168_v51, %v151_v33 }
 0x203   :  { %v171_v53 = vpack.c.bf16 %v170_v52, %v170_v52 }
 0x205   :  { %176 = vrot.lane.b32.xlu1 %v171_v53, %s1510_s3 }
 0x277   :  { %v177_v54 = vpop.permute.xlu1 %176 }
 0x278   :  { %1248 = vmatmul.msk.bf16.vlgmr.msra.gmra.mxu2 %vm116_vm6, %v177_v54  ;;  %1250 = vmatmul.msk.bf16.vlgmr.msrb.gmra.mxu0 %vm116_vm6, %v177_v54 }
 0x279   :  { %523 = vmatpush.bf16.msra.mxu2 %v1577_v3  ;;  %608 = vmatpush.bf16.msrb.mxu0 %v1615_v46 }
 0x27d   :  { %524 = vmatpush.bf16.msra.mxu2 %v1592_v11  ;;  %609 = vmatpush.bf16.msrb.mxu0 %v1622_v50 }
 0x2f5   :  { %v254_v58 = vpop.f32.mrf.mxu0 }
 0x2f6   :  { %v259_v59 = vrot.slane %v254_v58, 6 }
 0x2f8   :  { %v261_v60 = vadd.f32 %v259_v59, %v1604_v15 }
 0x2fa   :  { %1305 = vtanh.f32 %v261_v60  ;;  %v1251_v6 = vmul.f32 -1.442695, %v261_v60 }
 0x2fb   :  { %v190_v62 = vpop.f32.mrf.mxu2 }
 0x2fc   :  { %v191_v63 = vadd.f32 %v1651_v61, %v190_v62 }
 0x2fd   :  { %v256_v0 = vpop.f32.mrf.mxu0 }
 0x2fe   :  { %v207_v1 = vadd.f32 %v203_v55, %v191_v63 }
 0x300   :  { %v1306_v2 = vpop.eup %1305  ;;  %1307 = vtanh.f32 %v207_v1  ;;  %v1249_v7 = vmul.f32 -1.442695, %v207_v1 }
 0x301   :  { %287 = vrot.lane.b32.xlu2 %v1306_v2, %s1509_s2  ;;  %1309 = vpow2.f32 %v1251_v6 }
 0x302   :  { %1311 = vpow2.f32 %v1249_v7 }
 0x303   :  { %v192_v4 = vpop.f32.mrf.mxu2 }
 0x306   :  { %v1308_v5 = vpop.eup %1307 }
 0x307   :  { %v1310_v8 = vpop.eup %1309 }
 0x308   :  { %v265_v9 = vadd.f32 1.0, %v1310_v8  ;;  %v1312_v10 = vpop.eup %1311 }
 0x309   :  { %230 = vrot.lane.b32.xlu2 %v1308_v5, %s1509_s2  ;;  %v211_v12 = vadd.f32 1.0, %v1312_v10 }
 0x30a   :  { %1313 = vrcp.f32 %v265_v9  ;;  %v277_v23 = vand.u32 2147483648, %v265_v9  ;;  %vm271_vm8 = vweird.f32 %v265_v9  ;;  %v275_v24 = vand.u32 2147483647, %v265_v9 }
 0x30b   :  { %1315 = vrcp.f32 %v211_v12  ;;  %v223_v32 = vand.u32 2147483648, %v211_v12  ;;  %vm217_vm12 = vweird.f32 %v211_v12  ;;  %v221_v33 = vand.u32 2147483647, %v211_v12 }
 0x30c   :  { %v278_v27 = vor.u32 1.1754944e-38, %v277_v23  ;;  %vm276_vm10 = vcmp.eq.f32.partialorder %v275_v24, 8.507059e+37 }
 0x30d   :  { %v224_v35 = vor.u32 1.1754944e-38, %v223_v32  ;;  %vm222_vm14 = vcmp.eq.f32.partialorder %v221_v33, 8.507059e+37 }
 0x310   :  { %v1314_v14 = vpop.eup %1313 }
 0x311   :  { %v267_v16 = vmul.f32 %v1314_v14, %v265_v9  ;;  %v1316_v18 = vpop.eup %1315  ;;  %vm272_vm7 = vweird.f32 %v1314_v14 }
 0x312   :  { %v213_v20 = vmul.f32 %v1316_v18, %v211_v12  ;;  %vm273_vm9 = vmor %vm271_vm8, %vm272_vm7  ;;  %vm218_vm11 = vweird.f32 %v1316_v18 }
 0x313   :  { %v268_v17 = vsub.f32 1.0, %v267_v16  ;;  %vm219_vm13 = vmor %vm217_vm12, %vm218_vm11 }
 0x314   :  { %v214_v22 = vsub.f32 1.0, %v213_v20 }
 0x315   :  { %v269_v19 = vmul.f32 %v1314_v14, %v268_v17 }
 0x316   :  { %v215_v26 = vmul.f32 %v1316_v18, %v214_v22 }
 0x317   :  { %v270_v21 = vadd.f32 %v1314_v14, %v269_v19 }
 0x318   :  { %v216_v31 = vadd.f32 %v1316_v18, %v215_v26 }
 0x319   :  { %v274_v25 = vsel %vm273_vm9, %v1314_v14, %v270_v21 }
 0x31a   :  { %v279_v29 = vsel %vm276_vm10, %v278_v27, %v274_v25  ;;  %v220_v34 = vsel %vm219_vm13, %v1316_v18, %v216_v31 }
 0x31b   :  { %v225_v38 = vsel %vm222_vm14, %v224_v35, %v220_v34  ;;  %v285_v41 = vmul.f32 %v283_v40, %v279_v29 }
 0x31c   :  { %v228_v45 = vmul.f32 0.0, %v225_v38 }
 0x35b   :  { %v288_v28 = vpop.permute.xlu2 %287 }
 0x35c   :  { %v290_v30 = vmul.f32 %v288_v28, %v279_v29 }
 0x35e   :  { %292 = vrot.lane.b32.xlu0 %v290_v30, %s1510_s3 }
 0x363   :  { %v231_v36 = vpop.permute.xlu2 %230 }
 0x364   :  { %v233_v39 = vmul.f32 %v231_v36, %v225_v38 }
 0x366   :  { %235 = vrot.lane.b32.xlu1 %v233_v39, %s1510_s3 }
 0x3d0   :  { %v293_v43 = vpop.permute.xlu0 %292 }
 0x3d1   :  { %v1659_v44 = vadd.f32 %v293_v43, %v285_v41 }
 0x3d3   :  { %1317 = vtanh.f32 %v1659_v44 }
 0x3d8   :  { %v236_v47 = vpop.permute.xlu1 %235 }
 0x3d9   :  { %v1318_v48 = vpop.eup %1317  ;;  %v1662_v51 = vadd.f32 %v236_v47, %v228_v45 }
 0x3da   :  { %298 = vrot.lane.b32.xlu2 %v1318_v48, %s1509_s2 }
 0x3db   :  { %1319 = vtanh.f32 %v1662_v51 }
 0x3e1   :  { %v1320_v52 = vpop.eup %1319 }
 0x3e2   :  { %241 = vrot.lane.b32.xlu0 %v1320_v52, %s1509_s2  ;;  %v419_v52 = vrot.slane %v1659_v44, 6 }
 0x434   :  { %v299_v53 = vpop.permute.xlu2 %298 }
 0x435   :  { %v301_v37 = vmul.f32 %v299_v53, %v279_v29 }
 0x437   :  { %v302_v54 = vpack.c.bf16 %v301_v37, %v301_v37 }
 0x439   :  { %v304_v55 = vrot.slane %v302_v54, 1 }
 0x43b   :  { %305 = vrot.lane.b32.xlu1 %v304_v55, %s1510_s3 }
 0x454   :  { %v242_v56 = vpop.permute.xlu0 %241 }
 0x455   :  { %v244_v58 = vmul.f32 %v242_v56, %v225_v38 }
 0x457   :  { %v323_v59 = vpack.c.bf16 %v244_v58, %v244_v58 }
 0x459   :  { %325 = vrot.lane.b32.xlu2 %v323_v59, %s1510_s3 }
 0x4ad   :  { %v306_v60 = vpop.permute.xlu1 %305 }
 0x4ae   :  { %1252 = vmatmul.msk.bf16.vlgmr.msrb.gmra.mxu1 %vm116_vm6, %v306_v60  ;;  %1255 = vmatmul.msk.bf16.vlgmr.msrb.gmra.mxu3 %vm116_vm6, %v306_v60 }
 0x4af   :  { %659 = vmatpush.bf16.msrb.mxu1 %v1577_v3  ;;  %740 = vmatpush.bf16.msrb.mxu3 %v1615_v46 }
 0x4b3   :  { %v326_v62 = vpop.permute.xlu2 %325  ;;  %660 = vmatpush.bf16.msrb.mxu1 %v1592_v11  ;;  %741 = vmatpush.bf16.msrb.mxu3 %v1622_v50 }
 0x4b4   :  { %1253 = vmatmul.msk.bf16.vlgmr.msrb.gmra.mxu2 %vm116_vm6, %v326_v62 }
 0x4b5   :  { %720 = vmatpush.bf16.msrb.mxu2 %v1613_v42 }
 0x4b9   :  { %721 = vmatpush.bf16.msrb.mxu2 %v1618_v49 }
 0x52b   :  { %v319_v63 = vpop.f32.mrf.mxu1 }
 0x52c   :  { %v320_v5 = vadd.f32 %v1651_v61, %v319_v63 }
 0x531   :  { %v390_v0 = vpop.f32.mrf.mxu3 }
 0x532   :  { %v395_v1 = vrot.slane %v390_v0, 4 }
 0x533   :  { %v321_v2 = vpop.f32.mrf.mxu1 }
 0x534   :  { %v397_v4 = vadd.f32 %v395_v1, %v1604_v15 }
 0x536   :  { %1321 = vtanh.f32 %v397_v4  ;;  %v1256_v14 = vmul.f32 -1.442695, %v397_v4 }
 0x537   :  { %v339_v6 = vpop.f32.mrf.mxu2 }
 0x538   :  { %v343_v7 = vadd.f32 %v339_v6, %v320_v5 }
 0x539   :  { %v392_v8 = vpop.f32.mrf.mxu3 }
 0x53a   :  { %1323 = vtanh.f32 %v343_v7  ;;  %v1254_v16 = vmul.f32 -1.442695, %v343_v7 }
 0x53b   :  { %1325 = vpow2.f32 %v1256_v14 }
 0x53c   :  { %v1322_v9 = vpop.eup %1321  ;;  %1327 = vpow2.f32 %v1254_v16 }
 0x53d   :  { %423 = vrot.lane.b32.xlu0 %v1322_v9, %s1509_s2 }
 0x53f   :  { %v341_v10 = vpop.f32.mrf.mxu2 }
 0x540   :  { %v1324_v12 = vpop.eup %1323 }
 0x541   :  { %366 = vrot.lane.b32.xlu1 %v1324_v12, %s1509_s2  ;;  %v1326_v17 = vpop.eup %1325 }
 0x542   :  { %v401_v18 = vadd.f32 1.0, %v1326_v17  ;;  %v1328_v19 = vpop.eup %1327 }
 0x543   :  { %v347_v20 = vadd.f32 1.0, %v1328_v19 }
 0x544   :  { %1329 = vrcp.f32 %v401_v18  ;;  %v413_v30 = vand.u32 2147483648, %v401_v18  ;;  %vm407_vm0 = vweird.f32 %v401_v18  ;;  %v411_v31 = vand.u32 2147483647, %v401_v18 }
 0x545   :  { %1331 = vrcp.f32 %v347_v20  ;;  %v359_v35 = vand.u32 2147483648, %v347_v20  ;;  %vm353_vm4 = vweird.f32 %v347_v20  ;;  %v357_v36 = vand.u32 2147483647, %v347_v20 }
 0x546   :  { %v414_v34 = vor.u32 1.1754944e-38, %v413_v30  ;;  %vm412_vm3 = vcmp.eq.f32.partialorder %v411_v31, 8.507059e+37 }
 0x547   :  { %v360_v43 = vor.u32 1.1754944e-38, %v359_v35  ;;  %vm358_vm7 = vcmp.eq.f32.partialorder %v357_v36, 8.507059e+37 }
 0x54a   :  { %v1330_v21 = vpop.eup %1329 }
 0x54b   :  { %v403_v22 = vmul.f32 %v1330_v21, %v401_v18  ;;  %v1332_v23 = vpop.eup %1331  ;;  %vm408_vm15 = vweird.f32 %v1330_v21 }
 0x54c   :  { %v349_v25 = vmul.f32 %v1332_v23, %v347_v20  ;;  %vm409_vm1 = vmor %vm407_vm0, %vm408_vm15  ;;  %vm354_vm2 = vweird.f32 %v1332_v23 }
 0x54d   :  { %v404_v24 = vsub.f32 1.0, %v403_v22  ;;  %vm355_vm5 = vmor %vm353_vm4, %vm354_vm2 }
 0x54e   :  { %v350_v27 = vsub.f32 1.0, %v349_v25 }
 0x54f   :  { %v405_v26 = vmul.f32 %v1330_v21, %v404_v24 }
 0x550   :  { %v351_v29 = vmul.f32 %v1332_v23, %v350_v27 }
 0x551   :  { %v406_v28 = vadd.f32 %v1330_v21, %v405_v26 }
 0x552   :  { %v352_v33 = vadd.f32 %v1332_v23, %v351_v29 }
 0x553   :  { %v410_v32 = vsel %vm409_vm1, %v1330_v21, %v406_v28 }
 0x554   :  { %v415_v38 = vsel %vm412_vm3, %v414_v34, %v410_v32  ;;  %v356_v41 = vsel %vm355_vm5, %v1332_v23, %v352_v33 }
 0x555   :  { %v361_v47 = vsel %vm358_vm7, %v360_v43, %v356_v41  ;;  %v421_v53 = vmul.f32 %v419_v52, %v415_v38 }
 0x556   :  { %v364_v56 = vmul.f32 %v361_v47, %v1662_v51 }
 0x5af   :  { %v424_v39 = vpop.permute.xlu0 %423 }
 0x5b0   :  { %v426_v40 = vmul.f32 %v424_v39, %v415_v38 }
 0x5b2   :  { %428 = vrot.lane.b32.xlu2 %v426_v40, %s1510_s3 }
 0x5b3   :  { %v367_v45 = vpop.permute.xlu1 %366 }
 0x5b4   :  { %v369_v48 = vmul.f32 %v367_v45, %v361_v47 }
 0x5b6   :  { %371 = vrot.lane.b32.xlu0 %v369_v48, %s1510_s3 }
 0x60c   :  { %v429_v37 = vpop.permute.xlu2 %428 }
 0x60d   :  { %v1685_v54 = vadd.f32 %v429_v37, %v421_v53 }
 0x60f   :  { %1333 = vtanh.f32 %v1685_v54 }
 0x615   :  { %v1334_v55 = vpop.eup %1333 }
 0x616   :  { %434 = vrot.lane.b32.xlu1 %v1334_v55, %s1509_s2 }
 0x628   :  { %v372_v58 = vpop.permute.xlu0 %371 }
 0x629   :  { %v1690_v59 = vadd.f32 %v372_v58, %v364_v56 }
 0x62b   :  { %1335 = vtanh.f32 %v1690_v59 }
 0x631   :  { %v1336_v60 = vpop.eup %1335 }
 0x632   :  { %377 = vrot.lane.b32.xlu2 %v1336_v60, %s1509_s2 }
 0x688   :  { %v435_v44 = vpop.permute.xlu1 %434 }
 0x689   :  { %v437_v62 = vmul.f32 %v435_v44, %v415_v38 }
 0x68b   :  { %v438_v63 = vpack.c.bf16 %v437_v62, %v437_v62  ;;  %v555_v62 = vrot.slane %v1685_v54, 6 }
 0x68c   :  { %v378_v0 = vpop.permute.xlu2 %377 }
 0x68d   :  { %v440_v1 = vrot.slane %v438_v63, 2  ;;  %v380_v2 = vmul.f32 %v378_v0, %v361_v47 }
 0x68f   :  { %v459_v4 = vpack.c.bf16 %v380_v2, %v380_v2  ;;  %441 = vrot.lane.b32.xlu0 %v440_v1, %s1510_s3 }
 0x691   :  { %461 = vrot.lane.b32.xlu1 %v459_v4, %s1510_s3 }
 0x701   :  { %v442_v51 = vpop.permute.xlu0 %441 }
 0x702   :  { %1257 = vmatmul.msk.bf16.vlgmr.msra.gmra.mxu0 %vm116_vm6, %v442_v51  ;;  %1260 = vmatmul.msk.bf16.vlgmr.msra.gmra.mxu2 %vm116_vm6, %v442_v51 }
 0x703   :  { %v462_v5 = vpop.permute.xlu1 %461  ;;  %791 = vmatpush.bf16.msra.mxu0 %v1577_v3  ;;  %876 = vmatpush.bf16.msra.mxu2 %v1615_v46 }
 0x704   :  { %1258 = vmatmul.msk.bf16.vlgmr.msra.gmra.mxu1 %vm116_vm6, %v462_v5 }
 0x705   :  { %856 = vmatpush.bf16.msra.mxu1 %v1613_v42 }
 0x707   :  { %792 = vmatpush.bf16.msra.mxu0 %v1592_v11  ;;  %877 = vmatpush.bf16.msra.mxu2 %v1622_v50 }
 0x709   :  { %857 = vmatpush.bf16.msra.mxu1 %v1618_v49 }
 0x77f   :  { %v455_v6 = vpop.f32.mrf.mxu0 }
 0x780   :  { %v456_v7 = vadd.f32 %v1651_v61, %v455_v6 }
 0x781   :  { %v475_v8 = vpop.f32.mrf.mxu1 }
 0x782   :  { %v479_v9 = vadd.f32 %v475_v8, %v456_v7 }
 0x784   :  { %1337 = vtanh.f32 %v479_v9  ;;  %v1259_v24 = vmul.f32 -1.442695, %v479_v9 }
 0x785   :  { %v526_v10 = vpop.f32.mrf.mxu2 }
 0x786   :  { %v531_v12 = vrot.slane %v526_v10, 2 }
 0x787   :  { %v457_v14 = vpop.f32.mrf.mxu0 }
 0x788   :  { %v533_v16 = vadd.f32 %v531_v12, %v1604_v15  ;;  %v1734_v12 = vadd.f32 %v1601_v13, %v1645_v57 }
 0x789   :  { %v477_v17 = vpop.f32.mrf.mxu1 }
 0x78a   :  { %v1338_v18 = vpop.eup %1337  ;;  %1339 = vtanh.f32 %v533_v16  ;;  %v1261_v21 = vmul.f32 -1.442695, %v533_v16 }
 0x78b   :  { %502 = vrot.lane.b32.xlu0 %v1338_v18, %s1509_s2 }
 0x78c   :  { %1341 = vpow2.f32 %v1261_v21 }
 0x78d   :  { %v528_v19 = vpop.f32.mrf.mxu2 }
 0x790   :  { %v1340_v20 = vpop.eup %1339 }
 0x791   :  { %559 = vrot.lane.b32.xlu2 %v1340_v20, %s1509_s2 }
 0x792   :  { %v1342_v22 = vpop.eup %1341 }
 0x793   :  { %v537_v23 = vadd.f32 1.0, %v1342_v22 }
 0x795   :  { %1343 = vrcp.f32 %v537_v23  ;;  %v549_v31 = vand.u32 2147483648, %v537_v23  ;;  %vm543_vm9 = vweird.f32 %v537_v23  ;;  %v547_v32 = vand.u32 2147483647, %v537_v23 }
 0x796   :  { %1345 = vpow2.f32 %v1259_v24 }
 0x797   :  { %v550_v35 = vor.u32 1.1754944e-38, %v549_v31  ;;  %vm548_vm11 = vcmp.eq.f32.partialorder %v547_v32, 8.507059e+37 }
 0x79b   :  { %v1344_v25 = vpop.eup %1343 }
 0x79c   :  { %v539_v26 = vmul.f32 %v1344_v25, %v537_v23  ;;  %v1346_v27 = vpop.eup %1345  ;;  %vm544_vm8 = vweird.f32 %v1344_v25 }
 0x79d   :  { %v483_v28 = vadd.f32 1.0, %v1346_v27  ;;  %vm545_vm10 = vmor %vm543_vm9, %vm544_vm8 }
 0x79e   :  { %v540_v15 = vsub.f32 1.0, %v539_v26 }
 0x79f   :  { %1347 = vrcp.f32 %v483_v28  ;;  %v495_v47 = vand.u32 2147483648, %v483_v28  ;;  %vm489_vm13 = vweird.f32 %v483_v28  ;;  %v493_v48 = vand.u32 2147483647, %v483_v28 }
 0x7a0   :  { %v541_v29 = vmul.f32 %v1344_v25, %v540_v15 }
 0x7a1   :  { %v496_v53 = vor.u32 1.1754944e-38, %v495_v47  ;;  %vm494_vm15 = vcmp.eq.f32.partialorder %v493_v48, 8.507059e+37 }
 0x7a2   :  { %v542_v30 = vadd.f32 %v1344_v25, %v541_v29 }
 0x7a4   :  { %v546_v34 = vsel %vm545_vm10, %v1344_v25, %v542_v30 }
 0x7a5   :  { %v1348_v33 = vpop.eup %1347  ;;  %v551_v39 = vsel %vm548_vm11, %v550_v35, %v546_v34 }
 0x7a6   :  { %v485_v36 = vmul.f32 %v1348_v33, %v483_v28  ;;  %vm490_vm12 = vweird.f32 %v1348_v33  ;;  %v557_v63 = vmul.f32 %v555_v62, %v551_v39 }
 0x7a7   :  { %vm491_vm14 = vmor %vm489_vm13, %vm490_vm12 }
 0x7a8   :  { %v486_v41 = vsub.f32 1.0, %v485_v36 }
 0x7aa   :  { %v487_v43 = vmul.f32 %v1348_v33, %v486_v41 }
 0x7ac   :  { %v488_v45 = vadd.f32 %v1348_v33, %v487_v43 }
 0x7ae   :  { %v492_v52 = vsel %vm491_vm14, %v1348_v33, %v488_v45 }
 0x7af   :  { %v497_v55 = vsel %vm494_vm15, %v496_v53, %v492_v52 }
 0x7b0   :  { %v500_v58 = vmul.f32 %v497_v55, %v1690_v59 }
 0x7eb   :  { %v560_v38 = vpop.permute.xlu2 %559 }
 0x7ec   :  { %v562_v40 = vmul.f32 %v560_v38, %v551_v39 }
 0x7ee   :  { %564 = vrot.lane.b32.xlu1 %v562_v40, %s1510_s3 }
 0x7fd   :  { %v503_v37 = vpop.permute.xlu0 %502 }
 0x7fe   :  { %v505_v56 = vmul.f32 %v503_v37, %v497_v55 }
 0x800   :  { %507 = vrot.lane.b32.xlu2 %v505_v56, %s1510_s3 }
 0x85a   :  { %v508_v60 = vpop.permute.xlu2 %507 }
 0x85b   :  { %v1712_v44 = vadd.f32 %v508_v60, %v500_v58 }
 0x85d   :  { %1349 = vtanh.f32 %v1712_v44 }
 0x860   :  { %v565_v0 = vpop.permute.xlu1 %564 }
 0x861   :  { %v1716_v1 = vadd.f32 %v565_v0, %v557_v63 }
 0x863   :  { %v1350_v2 = vpop.eup %1349  ;;  %1351 = vtanh.f32 %v1716_v1 }
 0x864   :  { %513 = vrot.lane.b32.xlu1 %v1350_v2, %s1509_s2 }
 0x869   :  { %v1352_v4 = vpop.eup %1351 }
 0x86a   :  { %570 = vrot.lane.b32.xlu0 %v1352_v4, %s1509_s2  ;;  %v688_v4 = vrot.slane %v1716_v1, 6 }
 0x8d6   :  { %v514_v59 = vpop.permute.xlu1 %513 }
 0x8d7   :  { %v516_v51 = vmul.f32 %v514_v59, %v497_v55 }
 0x8d9   :  { %v595_v5 = vpack.c.bf16 %v516_v51, %v516_v51 }
 0x8db   :  { %597 = vrot.lane.b32.xlu0 %v595_v5, %s1510_s3 }
 0x8dc   :  { %v571_v54 = vpop.permute.xlu0 %570 }
 0x8dd   :  { %v573_v6 = vmul.f32 %v571_v54, %v551_v39 }
 0x8df   :  { %v574_v7 = vpack.c.bf16 %v573_v6, %v573_v6 }
 0x8e1   :  { %v576_v8 = vrot.slane %v574_v7, 3 }
 0x8e3   :  { %577 = vrot.lane.b32.xlu2 %v576_v8, %s1510_s3 }
 0x93d   :  { %v578_v9 = vpop.permute.xlu2 %577 }
 0x93e   :  { %1262 = vmatmul.msk.bf16.vlgmr.msra.gmra.mxu3 %vm116_vm6, %v578_v9  ;;  %1265 = vmatmul.msk.bf16.vlgmr.msrb.gmra.mxu1 %vm116_vm6, %v578_v9 }
 0x93f   :  { %927 = vmatpush.bf16.msra.mxu3 %v1577_v3  ;;  %1012 = vmatpush.bf16.msrb.mxu1 %v1615_v46 }
 0x943   :  { %928 = vmatpush.bf16.msra.mxu3 %v1592_v11  ;;  %1013 = vmatpush.bf16.msrb.mxu1 %v1622_v50 }
 0x94d   :  { %v598_v10 = vpop.permute.xlu0 %597 }
 0x94e   :  { %1263 = vmatmul.msk.bf16.vlgmr.msrb.gmra.mxu0 %vm116_vm6, %v598_v10 }
 0x94f   :  { %992 = vmatpush.bf16.msrb.mxu0 %v1613_v42 }
 0x953   :  { %993 = vmatpush.bf16.msrb.mxu0 %v1618_v49 }
 0x9bb   :  { %v662_v14 = vpop.f32.mrf.mxu1 }
 0x9bc   :  { %v666_v16 = vadd.f32 %v662_v14, %v1734_v12 }
 0x9be   :  { %1353 = vtanh.f32 %v666_v16  ;;  %v1266_v57 = vmul.f32 -1.442695, %v666_v16 }
 0x9c1   :  { %v591_v17 = vpop.f32.mrf.mxu3 }
 0x9c2   :  { %v592_v21 = vadd.f32 %v1651_v61, %v591_v17 }
 0x9c3   :  { %v664_v18 = vpop.f32.mrf.mxu1 }
 0x9c4   :  { %v1354_v19 = vpop.eup %1353 }
 0x9c5   :  { %692 = vrot.lane.b32.xlu1 %v1354_v19, %s1509_s2 }
 0x9c9   :  { %v593_v20 = vpop.f32.mrf.mxu3 }
 0x9cb   :  { %v611_v22 = vpop.f32.mrf.mxu0 }
 0x9cc   :  { %v615_v23 = vadd.f32 %v611_v22, %v592_v21 }
 0x9ce   :  { %1355 = vtanh.f32 %v615_v23  ;;  %v1264_v13 = vmul.f32 -1.442695, %v615_v23 }
 0x9d0   :  { %1357 = vpow2.f32 %v1264_v13 }
 0x9d1   :  { %1359 = vpow2.f32 %v1266_v57 }
 0x9d3   :  { %v613_v24 = vpop.f32.mrf.mxu0 }
 0x9d4   :  { %v1356_v25 = vpop.eup %1355 }
 0x9d5   :  { %638 = vrot.lane.b32.xlu2 %v1356_v25, %s1509_s2 }
 0x9d6   :  { %v1358_v26 = vpop.eup %1357 }
 0x9d7   :  { %v619_v27 = vadd.f32 1.0, %v1358_v26  ;;  %v1360_v15 = vpop.eup %1359 }
 0x9d8   :  { %v670_v28 = vadd.f32 1.0, %v1360_v15 }
 0x9d9   :  { %1361 = vrcp.f32 %v619_v27  ;;  %v631_v38 = vand.u32 2147483648, %v619_v27  ;;  %vm625_vm1 = vweird.f32 %v619_v27  ;;  %v629_v39 = vand.u32 2147483647, %v619_v27 }
 0x9da   :  { %1363 = vrcp.f32 %v670_v28  ;;  %v682_v53 = vand.u32 2147483648, %v670_v28  ;;  %vm676_vm5 = vweird.f32 %v670_v28  ;;  %v680_v37 = vand.u32 2147483647, %v670_v28 }
 0x9db   :  { %v632_v43 = vor.u32 1.1754944e-38, %v631_v38  ;;  %vm630_vm3 = vcmp.eq.f32.partialorder %v629_v39, 8.507059e+37 }
 0x9dc   :  { %v683_v56 = vor.u32 1.1754944e-38, %v682_v53  ;;  %vm681_vm8 = vcmp.eq.f32.partialorder %v680_v37, 8.507059e+37 }
 0x9df   :  { %v1362_v29 = vpop.eup %1361 }
 0x9e0   :  { %v621_v30 = vmul.f32 %v1362_v29, %v619_v27  ;;  %v1364_v32 = vpop.eup %1363  ;;  %vm626_vm0 = vweird.f32 %v1362_v29 }
 0x9e1   :  { %v672_v34 = vmul.f32 %v1364_v32, %v670_v28  ;;  %vm627_vm2 = vmor %vm625_vm1, %vm626_vm0  ;;  %vm677_vm4 = vweird.f32 %v1364_v32 }
 0x9e2   :  { %v622_v31 = vsub.f32 1.0, %v621_v30  ;;  %vm678_vm7 = vmor %vm676_vm5, %vm677_vm4 }
 0x9e3   :  { %v673_v36 = vsub.f32 1.0, %v672_v34 }
 0x9e4   :  { %v623_v33 = vmul.f32 %v1362_v29, %v622_v31 }
 0x9e5   :  { %v674_v41 = vmul.f32 %v1364_v32, %v673_v36 }
 0x9e6   :  { %v624_v35 = vadd.f32 %v1362_v29, %v623_v33 }
 0x9e7   :  { %v675_v52 = vadd.f32 %v1364_v32, %v674_v41 }
 0x9e8   :  { %v628_v40 = vsel %vm627_vm2, %v1362_v29, %v624_v35 }
 0x9e9   :  { %v633_v47 = vsel %vm630_vm3, %v632_v43, %v628_v40  ;;  %v679_v55 = vsel %vm678_vm7, %v1364_v32, %v675_v52 }
 0x9ea   :  { %v684_v58 = vsel %vm681_vm8, %v683_v56, %v679_v55  ;;  %v636_v63 = vmul.f32 %v633_v47, %v1712_v44 }
 0x9eb   :  { %v690_v59 = vmul.f32 %v688_v4, %v684_v58 }
 0xa2f   :  { %v639_v45 = vpop.permute.xlu2 %638 }
 0xa30   :  { %v641_v48 = vmul.f32 %v639_v45, %v633_v47 }
 0xa32   :  { %643 = vrot.lane.b32.xlu1 %v641_v48, %s1510_s3 }
 0xa37   :  { %v693_v60 = vpop.permute.xlu1 %692 }
 0xa38   :  { %v695_v62 = vmul.f32 %v693_v60, %v684_v58 }
 0xa3a   :  { %697 = vrot.lane.b32.xlu0 %v695_v62, %s1510_s3 }
 0xaa4   :  { %v644_v0 = vpop.permute.xlu1 %643 }
 0xaa5   :  { %v1743_v2 = vadd.f32 %v644_v0, %v636_v63 }
 0xaa7   :  { %1365 = vtanh.f32 %v1743_v2 }
 0xaac   :  { %v698_v51 = vpop.permute.xlu0 %697 }
 0xaad   :  { %v1366_v5 = vpop.eup %1365  ;;  %v1747_v54 = vadd.f32 %v698_v51, %v690_v59 }
 0xaae   :  { %649 = vrot.lane.b32.xlu0 %v1366_v5, %s1509_s2 }
 0xaaf   :  { %1367 = vtanh.f32 %v1747_v54 }
 0xab5   :  { %v1368_v6 = vpop.eup %1367 }
 0xab6   :  { %703 = vrot.lane.b32.xlu2 %v1368_v6, %s1509_s2 }
 0xb10   :  { %v704_v44 = vpop.permute.xlu2 %703 }
 0xb11   :  { %v706_v7 = vmul.f32 %v704_v44, %v684_v58  ;;  %v823_v58 = vrot.slane %v1747_v54, 6 }
 0xb13   :  { %v707_v8 = vpack.c.bf16 %v706_v7, %v706_v7 }
 0xb15   :  { %709 = vrot.lane.b32.xlu1 %v707_v8, %s1510_s3 }
 0xb20   :  { %v650_v9 = vpop.permute.xlu0 %649 }
 0xb21   :  { %v652_v10 = vmul.f32 %v650_v9, %v633_v47 }
 0xb23   :  { %v727_v1 = vpack.c.bf16 %v652_v10, %v652_v10 }
 0xb25   :  { %729 = vrot.lane.b32.xlu2 %v727_v1, %s1510_s3 }
 0xb7f   :  { %v730_v14 = vpop.permute.xlu2 %729 }
 0xb80   :  { %1268 = vmatmul.msk.bf16.vlgmr.msrb.gmra.mxu3 %vm116_vm6, %v730_v14 }
 0xb81   :  { %1128 = vmatpush.bf16.msrb.mxu3 %v1613_v42 }
 0xb85   :  { %1129 = vmatpush.bf16.msrb.mxu3 %v1618_v49 }
 0xb87   :  { %v710_v16 = vpop.permute.xlu1 %709 }
 0xb88   :  { %1267 = vmatmul.msk.bf16.vlgmr.msrb.gmra.mxu2 %vm116_vm6, %v710_v16  ;;  %1270 = vmatmul.msk.bf16.vlgmr.msra.gmra.mxu0 %vm116_vm6, %v710_v16 }
 0xb89   :  { %1063 = vmatpush.bf16.msrb.mxu2 %v1577_v3  ;;  %1148 = vmatpush.bf16.msra.mxu0 %v1615_v46 }
 0xb8d   :  { %1064 = vmatpush.bf16.msrb.mxu2 %v1592_v11  ;;  %1149 = vmatpush.bf16.msra.mxu0 %v1622_v50 }
 0xc03   :  { %v743_v17 = vpop.f32.mrf.mxu3 }
 0xc05   :  { %v794_v18 = vpop.f32.mrf.mxu0 }
 0xc06   :  { %v799_v19 = vrot.slane %v794_v18, 6 }
 0xc08   :  { %v801_v42 = vadd.f32 %v799_v19, %v1734_v12 }
 0xc0a   :  { %1369 = vtanh.f32 %v801_v42  ;;  %v1271_v46 = vmul.f32 -1.442695, %v801_v42 }
 0xc0b   :  { %v723_v49 = vpop.f32.mrf.mxu2  ;;  %v745_v20 = vpop.f32.mrf.mxu3 }
 0xc0c   :  { %v724_v21 = vadd.f32 %v1651_v61, %v723_v49 }
 0xc0d   :  { %v796_v22 = vpop.f32.mrf.mxu0 }
 0xc0e   :  { %v747_v23 = vadd.f32 %v743_v17, %v724_v21 }
 0xc10   :  { %v1370_v24 = vpop.eup %1369  ;;  %1371 = vtanh.f32 %v747_v23  ;;  %v1269_v50 = vmul.f32 -1.442695, %v747_v23 }
 0xc11   :  { %827 = vrot.lane.b32.xlu0 %v1370_v24, %s1509_s2  ;;  %1373 = vpow2.f32 %v1271_v46 }
 0xc12   :  { %1375 = vpow2.f32 %v1269_v50 }
 0xc13   :  { %v725_v3 = vpop.f32.mrf.mxu2 }
 0xc16   :  { %v1372_v11 = vpop.eup %1371 }
 0xc17   :  { %770 = vrot.lane.b32.xlu1 %v1372_v11, %s1509_s2  ;;  %v1374_v25 = vpop.eup %1373 }
 0xc18   :  { %v805_v13 = vadd.f32 1.0, %v1374_v25  ;;  %v1376_v57 = vpop.eup %1375 }
 0xc19   :  { %v751_v26 = vadd.f32 1.0, %v1376_v57 }
 0xc1a   :  { %1377 = vrcp.f32 %v805_v13  ;;  %v817_v34 = vand.u32 2147483648, %v805_v13  ;;  %vm811_vm10 = vweird.f32 %v805_v13  ;;  %v815_v35 = vand.u32 2147483647, %v805_v13 }
 0xc1b   :  { %1379 = vrcp.f32 %v751_v26  ;;  %v763_v45 = vand.u32 2147483648, %v751_v26  ;;  %vm757_vm14 = vweird.f32 %v751_v26  ;;  %v761_v48 = vand.u32 2147483647, %v751_v26 }
 0xc1c   :  { %v818_v39 = vor.u32 1.1754944e-38, %v817_v34  ;;  %vm816_vm12 = vcmp.eq.f32.partialorder %v815_v35, 8.507059e+37 }
 0xc1d   :  { %v764_v53 = vor.u32 1.1754944e-38, %v763_v45  ;;  %vm762_vm0 = vcmp.eq.f32.partialorder %v761_v48, 8.507059e+37 }
 0xc20   :  { %v1378_v27 = vpop.eup %1377 }
 0xc21   :  { %v807_v15 = vmul.f32 %v1378_v27, %v805_v13  ;;  %v1380_v28 = vpop.eup %1379  ;;  %vm812_vm9 = vweird.f32 %v1378_v27 }
 0xc22   :  { %v753_v30 = vmul.f32 %v1380_v28, %v751_v26  ;;  %vm813_vm11 = vmor %vm811_vm10, %vm812_vm9  ;;  %vm758_vm13 = vweird.f32 %v1380_v28 }
 0xc23   :  { %v808_v29 = vsub.f32 1.0, %v807_v15  ;;  %vm759_vm15 = vmor %vm757_vm14, %vm758_vm13 }
 0xc24   :  { %v754_v32 = vsub.f32 1.0, %v753_v30 }
 0xc25   :  { %v809_v31 = vmul.f32 %v1378_v27, %v808_v29 }
 0xc26   :  { %v755_v36 = vmul.f32 %v1380_v28, %v754_v32 }
 0xc27   :  { %v810_v33 = vadd.f32 %v1378_v27, %v809_v31 }
 0xc28   :  { %v756_v40 = vadd.f32 %v1380_v28, %v755_v36 }
 0xc29   :  { %v814_v38 = vsel %vm813_vm11, %v1378_v27, %v810_v33 }
 0xc2a   :  { %v819_v43 = vsel %vm816_vm12, %v818_v39, %v814_v38  ;;  %v760_v52 = vsel %vm759_vm15, %v1380_v28, %v756_v40 }
 0xc2b   :  { %v765_v55 = vsel %vm762_vm0, %v764_v53, %v760_v52  ;;  %v825_v60 = vmul.f32 %v823_v58, %v819_v43 }
 0xc2c   :  { %v768_v4 = vmul.f32 %v765_v55, %v1743_v2 }
 0xc83   :  { %v828_v41 = vpop.permute.xlu0 %827 }
 0xc84   :  { %v830_v47 = vmul.f32 %v828_v41, %v819_v43 }
 0xc86   :  { %832 = vrot.lane.b32.xlu2 %v830_v47, %s1510_s3 }
 0xc89   :  { %v771_v37 = vpop.permute.xlu1 %770 }
 0xc8a   :  { %v773_v56 = vmul.f32 %v771_v37, %v765_v55 }
 0xc8c   :  { %775 = vrot.lane.b32.xlu0 %v773_v56, %s1510_s3 }
 0xce0   :  { %v833_v62 = vpop.permute.xlu2 %832 }
 0xce1   :  { %v1770_v63 = vadd.f32 %v833_v62, %v825_v60 }
 0xce3   :  { %1381 = vtanh.f32 %v1770_v63  ;;  %v959_v37 = vrot.slane %v1770_v63, 6 }
 0xce9   :  { %v1382_v0 = vpop.eup %1381 }
 0xcea   :  { %838 = vrot.lane.b32.xlu1 %v1382_v0, %s1509_s2 }
 0xcfe   :  { %v776_v59 = vpop.permute.xlu0 %775 }
 0xcff   :  { %v1775_v51 = vadd.f32 %v776_v59, %v768_v4 }
 0xd01   :  { %1383 = vtanh.f32 %v1775_v51 }
 0xd07   :  { %v1384_v5 = vpop.eup %1383 }
 0xd08   :  { %781 = vrot.lane.b32.xlu2 %v1384_v5, %s1509_s2 }
 0xd5c   :  { %v839_v54 = vpop.permute.xlu1 %838 }
 0xd5d   :  { %v841_v6 = vmul.f32 %v839_v54, %v819_v43 }
 0xd5f   :  { %v842_v44 = vpack.c.bf16 %v841_v6, %v841_v6 }
 0xd61   :  { %v844_v7 = vrot.slane %v842_v44, 1 }
 0xd62   :  { %v782_v8 = vpop.permute.xlu2 %781 }
 0xd63   :  { %v784_v9 = vmul.f32 %v782_v8, %v765_v55  ;;  %845 = vrot.lane.b32.xlu0 %v844_v7, %s1510_s3 }
 0xd65   :  { %v863_v10 = vpack.c.bf16 %v784_v9, %v784_v9 }
 0xd67   :  { %865 = vrot.lane.b32.xlu1 %v863_v10, %s1510_s3 }
 0xdd5   :  { %v846_v2 = vpop.permute.xlu0 %845 }
 0xdd6   :  { %1272 = vmatmul.msk.bf16.vlgmr.msra.gmra.mxu1 %vm116_vm6, %v846_v2  ;;  %1275 = vmatmul.msk.bf16.vlgmr.msra.gmra.mxu3 %vm116_vm6, %v846_v2 }
 0xdd9   :  { %v866_v1 = vpop.permute.xlu1 %865 }
 0xdda   :  { %1273 = vmatmul.msk.bf16.vlgmr.msra.gmra.mxu2 %vm116_vm6, %v866_v1 }
 0xe53   :  { %v859_v14 = vpop.f32.mrf.mxu1 }
 0xe54   :  { %v860_v19 = vadd.f32 %v1651_v61, %v859_v14 }
 0xe59   :  { %v930_v16 = vpop.f32.mrf.mxu3 }
 0xe5a   :  { %v935_v17 = vrot.slane %v930_v16, 4 }
 0xe5b   :  { %v861_v18 = vpop.f32.mrf.mxu1 }
 0xe5c   :  { %v937_v42 = vadd.f32 %v935_v17, %v1734_v12 }
 0xe5d   :  { %v879_v49 = vpop.f32.mrf.mxu2 }
 0xe5e   :  { %1385 = vtanh.f32 %v937_v42  ;;  %v883_v20 = vadd.f32 %v879_v49, %v860_v19  ;;  %v1276_v3 = vmul.f32 -1.442695, %v937_v42  ;;  %v1810_v19 = vld [vmem:[%s1854_s6] ss:$0 sm:$0xff] }
 0xe60   :  { %1387 = vtanh.f32 %v883_v20  ;;  %v1274_v25 = vmul.f32 -1.442695, %v883_v20 }
 0xe61   :  { %v932_v21 = vpop.f32.mrf.mxu3  ;;  %1389 = vpow2.f32 %v1276_v3 }
 0xe64   :  { %v1386_v22 = vpop.eup %1385 }
 0xe65   :  { %963 = vrot.lane.b32.xlu2 %v1386_v22, %s1509_s2  ;;  %v881_v23 = vpop.f32.mrf.mxu2 }
 0xe66   :  { %v1388_v24 = vpop.eup %1387 }
 0xe67   :  { %906 = vrot.lane.b32.xlu0 %v1388_v24, %s1509_s2  ;;  %v1390_v11 = vpop.eup %1389 }
 0xe68   :  { %v941_v46 = vadd.f32 1.0, %v1390_v11 }
 0xe6a   :  { %1391 = vrcp.f32 %v941_v46  ;;  %v953_v15 = vand.u32 2147483648, %v941_v46  ;;  %vm947_vm2 = vweird.f32 %v941_v46  ;;  %v951_v29 = vand.u32 2147483647, %v941_v46 }
 0xe6b   :  { %1393 = vpow2.f32 %v1274_v25 }
 0xe6c   :  { %v954_v31 = vor.u32 1.1754944e-38, %v953_v15  ;;  %vm952_vm4 = vcmp.eq.f32.partialorder %v951_v29, 8.507059e+37 }
 0xe70   :  { %v1392_v61 = vpop.eup %1391 }
 0xe71   :  { %v943_v50 = vmul.f32 %v1392_v61, %v941_v46  ;;  %v1394_v26 = vpop.eup %1393  ;;  %vm948_vm1 = vweird.f32 %v1392_v61 }
 0xe72   :  { %v887_v28 = vadd.f32 1.0, %v1394_v26  ;;  %vm949_vm3 = vmor %vm947_vm2, %vm948_vm1 }
 0xe73   :  { %v944_v13 = vsub.f32 1.0, %v943_v50 }
 0xe74   :  { %1395 = vrcp.f32 %v887_v28  ;;  %v899_v41 = vand.u32 2147483648, %v887_v28  ;;  %vm893_vm7 = vweird.f32 %v887_v28  ;;  %v897_v43 = vand.u32 2147483647, %v887_v28 }
 0xe75   :  { %v945_v57 = vmul.f32 %v1392_v61, %v944_v13 }
 0xe76   :  { %v900_v47 = vor.u32 1.1754944e-38, %v899_v41  ;;  %vm898_vm9 = vcmp.eq.f32.partialorder %v897_v43, 8.507059e+37 }
 0xe77   :  { %v946_v27 = vadd.f32 %v1392_v61, %v945_v57 }
 0xe79   :  { %v950_v30 = vsel %vm949_vm3, %v1392_v61, %v946_v27 }
 0xe7a   :  { %v955_v32 = vsel %vm952_vm4, %v954_v31, %v950_v30  ;;  %v1396_v35 = vpop.eup %1395 }
 0xe7b   :  { %v889_v36 = vmul.f32 %v1396_v35, %v887_v28  ;;  %vm894_vm5 = vweird.f32 %v1396_v35  ;;  %v961_v55 = vmul.f32 %v959_v37, %v955_v32 }
 0xe7c   :  { %vm895_vm8 = vmor %vm893_vm7, %vm894_vm5  ;;  %vm1226_vm7 = vcmask 58368  }
 0xe7d   :  { %v890_v38 = vsub.f32 1.0, %v889_v36 }
 0xe7f   :  { %v891_v39 = vmul.f32 %v1396_v35, %v890_v38 }
 0xe81   :  { %v892_v40 = vadd.f32 %v1396_v35, %v891_v39 }
 0xe83   :  { %v896_v45 = vsel %vm895_vm8, %v1396_v35, %v892_v40 }
 0xe84   :  { %v901_v52 = vsel %vm898_vm9, %v900_v47, %v896_v45 }
 0xe85   :  { %v904_v60 = vmul.f32 %v901_v52, %v1775_v51 }
 0xebf   :  { %v964_v33 = vpop.permute.xlu2 %963 }
 0xec0   :  { %v966_v34 = vmul.f32 %v964_v33, %v955_v32 }
 0xec2   :  { %968 = vrot.lane.b32.xlu1 %v966_v34, %s1510_s3 }
 0xed9   :  { %v907_v48 = vpop.permute.xlu0 %906 }
 0xeda   :  { %v909_v53 = vmul.f32 %v907_v48, %v901_v52 }
 0xedc   :  { %911 = vrot.lane.b32.xlu2 %v909_v53, %s1510_s3 }
 0xf34   :  { %v969_v56 = vpop.permute.xlu1 %968 }
 0xf35   :  { %v1791_v58 = vadd.f32 %v969_v56, %v961_v55 }
 0xf36   :  { %v912_v62 = vpop.permute.xlu2 %911 }
 0xf37   :  { %1397 = vtanh.f32 %v1791_v58  ;;  %v1795_v0 = vadd.f32 %v912_v62, %v904_v60  ;;  %v1095_v37 = vrot.slane %v1791_v58, 6 }
 0xf39   :  { %1399 = vtanh.f32 %v1795_v0 }
 0xf3d   :  { %v1398_v4 = vpop.eup %1397 }
 0xf3e   :  { %974 = vrot.lane.b32.xlu0 %v1398_v4, %s1509_s2 }
 0xf3f   :  { %v1400_v59 = vpop.eup %1399 }
 0xf40   :  { %917 = vrot.lane.b32.xlu1 %v1400_v59, %s1509_s2 }
 0xfb0   :  { %v975_v63 = vpop.permute.xlu0 %974 }
 0xfb1   :  { %v977_v5 = vmul.f32 %v975_v63, %v955_v32 }
 0xfb2   :  { %v918_v6 = vpop.permute.xlu1 %917 }
 0xfb3   :  { %v978_v54 = vpack.c.bf16 %v977_v5, %v977_v5  ;;  %v920_v44 = vmul.f32 %v918_v6, %v901_v52 }
 0xfb5   :  { %v980_v7 = vrot.slane %v978_v54, 2  ;;  %v999_v51 = vpack.c.bf16 %v920_v44, %v920_v44 }
 0xfb7   :  { %981 = vrot.lane.b32.xlu2 %v980_v7, %s1510_s3  ;;  %1001 = vrot.lane.b32.xlu0 %v999_v51, %s1510_s3 }
0x1011   :  { %v982_v8 = vpop.permute.xlu2 %981 }
0x1012   :  { %1277 = vmatmul.msk.bf16.vlgmr.msrb.gmra.mxu0 %vm116_vm6, %v982_v8  ;;  %1280 = vmatmul.msk.bf16.vlgmr.msrb.gmra.mxu2 %vm116_vm6, %v982_v8 }
0x1029   :  { %v1002_v9 = vpop.permute.xlu0 %1001 }
0x102a   :  { %1278 = vmatmul.msk.bf16.vlgmr.msrb.gmra.mxu1 %vm116_vm6, %v1002_v9 }
0x108f   :  { %v995_v10 = vpop.f32.mrf.mxu0 }
0x1090   :  { %v996_v42 = vadd.f32 %v1810_v19, %v995_v10 }
0x1095   :  { %v1066_v2 = vpop.f32.mrf.mxu2 }
0x1096   :  { %v1071_v1 = vrot.slane %v1066_v2, 2 }
0x1097   :  { %v997_v14 = vpop.f32.mrf.mxu0 }
0x1098   :  { %v1073_v16 = vadd.f32 %v1071_v1, %v1734_v12 }
0x109a   :  { %1401 = vtanh.f32 %v1073_v16  ;;  %v1281_v23 = vmul.f32 -1.442695, %v1073_v16 }
0x109d   :  { %v1068_v17 = vpop.f32.mrf.mxu2 }
0x10a0   :  { %v1402_v18 = vpop.eup %1401 }
0x10a1   :  { %1099 = vrot.lane.b32.xlu1 %v1402_v18, %s1509_s2 }
0x10a7   :  { %v1015_v49 = vpop.f32.mrf.mxu1 }
0x10a8   :  { %v1019_v20 = vadd.f32 %v1015_v49, %v996_v42 }
0x10aa   :  { %1403 = vtanh.f32 %v1019_v20  ;;  %v1279_v12 = vmul.f32 -1.442695, %v1019_v20 }
0x10ac   :  { %1405 = vpow2.f32 %v1279_v12 }
0x10ad   :  { %1407 = vpow2.f32 %v1281_v23 }
0x10af   :  { %v1017_v21 = vpop.f32.mrf.mxu1 }
0x10b0   :  { %v1404_v22 = vpop.eup %1403 }
0x10b1   :  { %1042 = vrot.lane.b32.xlu2 %v1404_v22, %s1509_s2 }
0x10b2   :  { %v1406_v24 = vpop.eup %1405 }
0x10b3   :  { %v1023_v3 = vadd.f32 1.0, %v1406_v24  ;;  %v1408_v11 = vpop.eup %1407 }
0x10b4   :  { %v1077_v46 = vadd.f32 1.0, %v1408_v11 }
0x10b5   :  { %1409 = vrcp.f32 %v1023_v3  ;;  %v1035_v28 = vand.u32 2147483648, %v1023_v3  ;;  %vm1029_vm11 = vweird.f32 %v1023_v3  ;;  %v1033_v29 = vand.u32 2147483647, %v1023_v3 }
0x10b6   :  { %1411 = vrcp.f32 %v1077_v46  ;;  %v1089_v38 = vand.u32 2147483648, %v1077_v46  ;;  %vm1083_vm15 = vweird.f32 %v1077_v46  ;;  %v1087_v39 = vand.u32 2147483647, %v1077_v46 }
0x10b7   :  { %v1036_v32 = vor.u32 1.1754944e-38, %v1035_v28  ;;  %vm1034_vm13 = vcmp.eq.f32.partialorder %v1033_v29, 8.507059e+37 }
0x10b8   :  { %v1090_v41 = vor.u32 1.1754944e-38, %v1089_v38  ;;  %vm1088_vm1 = vcmp.eq.f32.partialorder %v1087_v39, 8.507059e+37 }
0x10bb   :  { %v1410_v61 = vpop.eup %1409 }
0x10bc   :  { %v1025_v50 = vmul.f32 %v1410_v61, %v1023_v3  ;;  %v1412_v25 = vpop.eup %1411  ;;  %vm1030_vm10 = vweird.f32 %v1410_v61 }
0x10bd   :  { %v1079_v57 = vmul.f32 %v1412_v25, %v1077_v46  ;;  %vm1031_vm12 = vmor %vm1029_vm11, %vm1030_vm10  ;;  %vm1084_vm14 = vweird.f32 %v1412_v25 }
0x10be   :  { %v1026_v13 = vsub.f32 1.0, %v1025_v50  ;;  %vm1085_vm0 = vmor %vm1083_vm15, %vm1084_vm14 }
0x10bf   :  { %v1080_v27 = vsub.f32 1.0, %v1079_v57  ;;  %v1196_v57 = vld [vmem:[%s1855_s7 + $0x18] sm:$0xff] }
0x10c0   :  { %v1027_v26 = vmul.f32 %v1410_v61, %v1026_v13  ;;  %1218 = vmatpush.msra.mxu1 %v1196_v57 }
0x10c1   :  { %v1081_v30 = vmul.f32 %v1412_v25, %v1080_v27  ;;  %v1194_v27 = vld [vmem:[%s1855_s7 + $0x8] sm:$0xff] }
0x10c2   :  { %v1028_v15 = vadd.f32 %v1410_v61, %v1027_v26  ;;  %v1195_v26 = vld [vmem:[%s1855_s7 + $0x10] sm:$0xff] }
0x10c3   :  { %v1082_v35 = vadd.f32 %v1412_v25, %v1081_v30  ;;  %1219 = vmatpush.msra.mxu1 %v1195_v26 }
0x10c4   :  { %v1032_v31 = vsel %vm1031_vm12, %v1410_v61, %v1028_v15  ;;  %v1193_v15 = vld [vmem:[%s1855_s7] sm:$0xff] }
0x10c5   :  { %v1037_v34 = vsel %vm1034_vm13, %v1036_v32, %v1032_v31  ;;  %v1086_v40 = vsel %vm1085_vm0, %v1412_v25, %v1082_v35  ;;  %1220 = vmatpush.msra.mxu1 %v1194_v27  ;;  %v1296_v31 = vld [vmem:[%s1856_s8] ss:$0 sm:$0xff] }
0x10c6   :  { %v1091_v45 = vsel %vm1088_vm1, %v1090_v41, %v1086_v40  ;;  %v1040_v48 = vmul.f32 %v1037_v34, %v1795_v0 }
0x10c7   :  { %v1097_v55 = vmul.f32 %v1095_v37, %v1091_v45  ;;  %1221 = vmatpush.msra.mxu1 %v1193_v15 }
0x110b   :  { %v1043_v33 = vpop.permute.xlu2 %1042 }
0x110c   :  { %v1045_v36 = vmul.f32 %v1043_v33, %v1037_v34 }
0x110e   :  { %1047 = vrot.lane.b32.xlu1 %v1045_v36, %s1510_s3 }
0x1113   :  { %v1100_v43 = vpop.permute.xlu1 %1099 }
0x1114   :  { %v1102_v47 = vmul.f32 %v1100_v43, %v1091_v45 }
0x1116   :  { %1104 = vrot.lane.b32.xlu0 %v1102_v47, %s1510_s3 }
0x1180   :  { %v1048_v52 = vpop.permute.xlu1 %1047 }
0x1181   :  { %v1050_v53 = vadd.f32 %v1048_v52, %v1040_v48 }
0x1183   :  { %1413 = vtanh.f32 %v1050_v53 }
0x1188   :  { %v1105_v56 = vpop.permute.xlu0 %1104 }
0x1189   :  { %v1107_v60 = vadd.f32 %v1105_v56, %v1097_v55  ;;  %v1414_v62 = vpop.eup %1413 }
0x118a   :  { %1053 = vrot.lane.b32.xlu0 %v1414_v62, %s1509_s2 }
0x118b   :  { %1415 = vtanh.f32 %v1107_v60 }
0x1191   :  { %v1416_v4 = vpop.eup %1415 }
0x1192   :  { %1110 = vrot.lane.b32.xlu2 %v1416_v4, %s1509_s2 }
0x11ec   :  { %v1111_v59 = vpop.permute.xlu2 %1110 }
0x11ed   :  { %v1113_v63 = vmul.f32 %v1111_v59, %v1091_v45 }
0x11ef   :  { %v1114_v5 = vpack.c.bf16 %v1113_v63, %v1113_v63 }
0x11f1   :  { %v1116_v54 = vrot.slane %v1114_v5, 3 }
0x11f3   :  { %1117 = vrot.lane.b32.xlu1 %v1116_v54, %s1510_s3 }
0x11fc   :  { %v1054_v0 = vpop.permute.xlu0 %1053 }
0x11fd   :  { %v1056_v6 = vmul.f32 %v1054_v0, %v1037_v34 }
0x11ff   :  { %v1135_v44 = vpack.c.bf16 %v1056_v6, %v1056_v6 }
0x1201   :  { %1137 = vrot.lane.b32.xlu2 %v1135_v44, %s1510_s3 }
0x125b   :  { %v1138_v58 = vpop.permute.xlu2 %1137 }
0x125c   :  { %1283 = vmatmul.msk.bf16.vlgmr.msra.gmra.mxu0 %vm116_vm6, %v1138_v58 }
0x1265   :  { %v1118_v7 = vpop.permute.xlu1 %1117 }
0x1266   :  { %1282 = vmatmul.msk.bf16.vlgmr.msrb.gmra.mxu3 %vm116_vm6, %v1118_v7 }
0x12d9   :  { %v1151_v51 = vpop.f32.mrf.mxu0 }
0x12e1   :  { %v1153_v8 = vpop.f32.mrf.mxu0 }
0x12e9   :  { %v1131_v9 = vpop.f32.mrf.mxu3 }
0x12ea   :  { %v1132_v10 = vadd.f32 %v1810_v19, %v1131_v9 }
0x12ec   :  { %v1155_v2 = vadd.f32 %v1151_v51, %v1132_v10 }
0x12ee   :  { %1417 = vtanh.f32 %v1155_v2  ;;  %v1284_v16 = vmul.f32 -1.442695, %v1155_v2 }
0x12f0   :  { %1419 = vpow2.f32 %v1284_v16 }
0x12f1   :  { %v1133_v1 = vpop.f32.mrf.mxu3 }
0x12f4   :  { %v1418_v14 = vpop.eup %1417 }
0x12f5   :  { %1178 = vrot.lane.b32.xlu0 %v1418_v14, %s1509_s2 }
0x12f6   :  { %v1420_v17 = vpop.eup %1419 }
0x12f7   :  { %v1159_v18 = vadd.f32 1.0, %v1420_v17 }
0x12f9   :  { %1421 = vrcp.f32 %v1159_v18  ;;  %v1171_v12 = vand.u32 2147483648, %v1159_v18  ;;  %vm1165_vm3 = vweird.f32 %v1159_v18  ;;  %v1169_v19 = vand.u32 2147483647, %v1159_v18 }
0x12fb   :  { %v1172_v24 = vor.u32 1.1754944e-38, %v1171_v12  ;;  %vm1170_vm5 = vcmp.eq.f32.partialorder %v1169_v19, 8.507059e+37 }
0x12ff   :  { %v1422_v42 = vpop.eup %1421 }
0x1300   :  { %v1161_v49 = vmul.f32 %v1422_v42, %v1159_v18  ;;  %vm1166_vm2 = vweird.f32 %v1422_v42 }
0x1301   :  { %vm1167_vm4 = vmor %vm1165_vm3, %vm1166_vm2 }
0x1302   :  { %v1162_v20 = vsub.f32 1.0, %v1161_v49 }
0x1304   :  { %v1163_v21 = vmul.f32 %v1422_v42, %v1162_v20 }
0x1306   :  { %v1164_v22 = vadd.f32 %v1422_v42, %v1163_v21 }
0x1308   :  { %v1168_v23 = vsel %vm1167_vm4, %v1422_v42, %v1164_v22 }
0x1309   :  { %v1173_v11 = vsel %vm1170_vm5, %v1172_v24, %v1168_v23 }
0x130a   :  { %v1176_v61 = vmul.f32 %v1173_v11, %v1050_v53 }
0x1367   :  { %v1179_v3 = vpop.permute.xlu0 %1178 }
0x1368   :  { %v1181_v46 = vmul.f32 %v1179_v3, %v1173_v11 }
0x136a   :  { %1183 = vrot.lane.b32.xlu1 %v1181_v46, %s1510_s3 }
0x13dc   :  { %v1184_v50 = vpop.permute.xlu1 %1183 }
0x13dd   :  { %v1186_v25 = vadd.f32 %v1184_v50, %v1176_v61 }
0x13df   :  { %1423 = vtanh.f32 %v1186_v25 }
0x13e5   :  { %v1424_v13 = vpop.eup %1423 }
0x13e6   :  { %1189 = vrot.lane.b32.xlu2 %v1424_v13, %s1509_s2 }
0x1440   :  { %v1190_v28 = vpop.permute.xlu2 %1189 }
0x1441   :  { %v1192_v29 = vmul.f32 %v1190_v28, %v1173_v11 }
0x1443   :  { %1202 = vrot.lane.b32.xlu0 %v1192_v29, %s1510_s3 }
0x14b5   :  { %v1203_v30 = vpop.permute.xlu0 %1202 }
0x14b6   :  { %1285 = vmatmul.msk.f32.vlgmr.msra.gmra.mxu1 %vm116_vm6, %v1203_v30 }
0x1533   :  { %v1223_v32 = vpop.f32.mrf.mxu1 }
0x1534   :  { %v1224_v33 = vadd.f32 %v1296_v31, %v1223_v32 }
0x1536   :  { %1227 = vst.msk [vmem:[#allocation7] sm:$0x3] %vm1226_vm7, %v1224_v33 }
0x1537   :  { %1238 = dma.vmem_to_hbm [thread:$0]  %s1234_s24, 32, %s1236_s27, [#allocation4]  }
0x1538   :  { %1502 = dma.done.wait [#allocation4], 32  }
0x1539   :  { %1503 = vsyncadd [#allocation4], 4294967264 }
0x153a   :  { %1243 = vsyncpa [#allocation3], 1 }
0x153b   :  { %1244 = vsyncpa [#allocation6], 1 }
0x153c   :  { %1245 = vsyncpa [#allocation4], 1 }

</bundles_post_ra>
